<compile_context>
chip_gen: v5e
topology: v5e:2x2
jax: 0.10.0
libtpu: 0.0.40
codegen_flags: <defaults>
</compile_context>

<pallas_src>
from functools import partial

import numpy as np
import jax
import jax.numpy as jnp
from jax.experimental import pallas as pl
from jax.experimental.pallas import tpu as pltpu

NEG_SLOPE = 0.01      # torch.nn.LeakyReLU default negative_slope
RES_SCALE = 0.2


def _round_up(v, t):
    return ((v + t - 1) // t) * t


# --------------------------------------------------------------------------
# Layout helpers: "extended padded-flat" activation layout
#   rows [0, EXT)              : zeros (guard band)
#   rows [EXT, EXT + P)        : the (H+2, W+2) padded image, row-major flattened
#   rows [EXT + P, EXT + 2EXT) : zeros (guard band)
# --------------------------------------------------------------------------
def _geom(H, W):
    wp2 = W + 2
    P = (H + 2) * wp2
    EXT = W + 3
    return wp2, P, EXT, P + 2 * EXT


def to_ext_flat(x_nhwc, mode):
    """(N, H, W, C) -> (N, P_ext, C) with zero/reflect spatial padding baked in."""
    N, H, W, C = x_nhwc.shape
    _, P, EXT, _ = _geom(H, W)
    pm = "reflect" if mode == "reflect" else "constant"
    xp = jnp.pad(x_nhwc, ((0, 0), (1, 1), (1, 1), (0, 0)), mode=pm)
    flat = xp.reshape(N, P, C)
    return jnp.pad(flat, ((0, 0), (EXT, EXT), (0, 0)))


def extract_valid(a_ext, H, W):
    """(N, P_ext, C) -> (N, H, W, C) valid region."""
    N = a_ext.shape[0]
    C = a_ext.shape[-1]
    wp2, P, EXT, _ = _geom(H, W)
    g = a_ext[:, EXT:EXT + P, :].reshape(N, H + 2, wp2, C)
    return g[:, 1:H + 1, 1:W + 1, :]


def _interior_mask(H, W):
    """(P, 1) f32: 1 on the interior of the padded grid, 0 on the border ring."""
    m = np.zeros((H + 2, W + 2), np.float32)
    m[1:H + 1, 1:W + 1] = 1.0
    return jnp.asarray(m.reshape((H + 2) * (W + 2), 1))


# --------------------------------------------------------------------------
# Fused conv3x3 Pallas kernel: 9*S shifted accumulating bf16 matmuls (f32 acc)
# + bias + activation + fused residual epilogue + border-zeroing mask.
# --------------------------------------------------------------------------
def _conv_kernel(*refs, S, n_res, res_scales, res_bcast, act, post_scale,
                 src0_scale, EXT, P, W):
    w_ref, b_ref, mask_ref = refs[0], refs[1], refs[2]
    src_refs = refs[3:3 + S]
    res_refs = refs[3 + S:3 + S + n_res]
    o_ref = refs[3 + S + n_res]
    coutp = o_ref.shape[-1]
    wp2 = W + 2

    acc = None
    for s in range(S):
        for t in range(9):
            di, dj = t // 3, t % 3
            off = (di - 1) * wp2 + (dj - 1)          # shift inside the flat grid
            a = src_refs[s][0, EXT + off:EXT + off + P, :]          # (P, 128) bf16
            d = jnp.dot(a, w_ref[s, t], preferred_element_type=jnp.float32)
            acc = d if acc is None else acc + d

    acc = acc + b_ref[...]                                          # (1, Coutp) f32
    if act == "leaky_relu":
        acc = jnp.where(acc > 0, acc, NEG_SLOPE * acc)
    if post_scale != 1.0:
        acc = acc * post_scale
    if src0_scale is not None:                      # residual add of source 0 (center tap)
        acc = acc + src0_scale * src_refs[0][0, EXT:EXT + P, :].astype(jnp.float32)
    for r in range(n_res):
        if res_bcast[r]:                            # channel-attention (1, Coutp) broadcast
            rv = res_refs[r][0].astype(jnp.float32)
        else:                                       # full activation, same flat layout
            rv = res_refs[r][0, EXT:EXT + P, :].astype(jnp.float32)
        acc = acc + res_scales[r] * rv
    acc = acc * mask_ref[...]                       # zero the border ring last

    o_ref[0, EXT:EXT + P, :] = acc.astype(o_ref.dtype)
    zs = jnp.zeros((EXT, coutp), o_ref.dtype)
    o_ref[0, 0:EXT, :] = zs
    o_ref[0, EXT + P:EXT + P + EXT, :] = zs


def conv3x3(sources, pk, H, W, *, act=None, post_scale=1.0, src0_res_scale=None,
            extra_res=(), out_dtype=jnp.bfloat16):
    """Fused 3x3 conv over a list of 128-channel sources in ext-flat layout.

    sources   : list of (N, P_ext, 128) bf16 tensors (zero/reflect padding baked in).
    pk        : packed conv params (see _pack_conv): w (S,9,128,Coutp) bf16, b (1,Coutp) f32.
    extra_res : list of (array, scale, is_broadcast) fused into the epilogue.
    Returns (N, P_ext, Coutp) in ext-flat layout with an exactly-zero border ring.
    """
    N = sources[0].shape[0]
    S, coutp = pk["S"], pk["coutp"]
    assert S == len(sources)
    _, P, EXT, P_ext = _geom(H, W)
    assert sources[0].shape[1] == P_ext
    mask = _interior_mask(H, W)

    res_arrays = [r[0] for r in extra_res]
    res_scales = tuple(float(r[1]) for r in extra_res)
    res_bcast = tuple(bool(r[2]) for r in extra_res)

    kernel = partial(_conv_kernel, S=S, n_res=len(extra_res),
                     res_scales=res_scales, res_bcast=res_bcast, act=act,
                     post_scale=float(post_scale),
                     src0_scale=None if src0_res_scale is None else float(src0_res_scale),
                     EXT=EXT, P=P, W=W)

    in_specs = [
        pl.BlockSpec((S, 9, 128, coutp), lambda n: (0, 0, 0, 0)),   # weights: resident
        pl.BlockSpec((1, coutp), lambda n: (0, 0)),                 # bias:    resident
        pl.BlockSpec((P, 1), lambda n: (0, 0)),                     # mask:    resident
    ]
    in_specs += [pl.BlockSpec((1, P_ext, 128), lambda n: (n, 0, 0))] * S
    for rb in res_bcast:
        if rb:
            in_specs.append(pl.BlockSpec((1, 1, coutp), lambda n: (n, 0, 0)))
        else:
            in_specs.append(pl.BlockSpec((1, P_ext, 128), lambda n: (n, 0, 0)))

    out_bytes = jnp.dtype(out_dtype).itemsize
    flops = 2 * N * P * (S * 9 * 128) * coutp
    bytes_accessed = (S * 9 * 128 * coutp * 2 + coutp * 4 + P * 4
                      + S * N * P_ext * 128 * 2
                      + N * P_ext * coutp * out_bytes
                      + sum((N * coutp * 4) if rb else (N * P_ext * 128 * 2)
                            for rb in res_bcast))

    return pl.pallas_call(
        kernel,
        out_shape=jax.ShapeDtypeStruct((N, P_ext, coutp), out_dtype),
        grid_spec=pltpu.PrefetchScalarGridSpec(
            num_scalar_prefetch=0,
            grid=(N,),
            in_specs=in_specs,
            out_specs=pl.BlockSpec((1, P_ext, coutp), lambda n: (n, 0, 0)),
        ),
        compiler_params=pltpu.CompilerParams(
            dimension_semantics=("parallel",),
            vmem_limit_bytes=32 * 1024 * 1024),
        cost_estimate=pl.CostEstimate(flops=int(flops), transcendentals=0,
                                      bytes_accessed=int(bytes_accessed)),
    )(pk["w"], pk["b"], mask, *sources, *res_arrays)


# --------------------------------------------------------------------------
# Small XLA glue: pixel shuffle + channel attention (tiny FCs)
# --------------------------------------------------------------------------
def pixel_shuffle(x, r):
    """NHWC pixel shuffle matching torch.nn.PixelShuffle channel ordering."""
    N, H, W, Cr2 = x.shape
    C = Cr2 // (r * r)
    x = x.reshape(N, H, W, C, r, r)
    x = jnp.transpose(x, (0, 1, 4, 2, 5, 3))
    return x.reshape(N, H * r, W * r, C)


def channel_attention(z_ext, ca, H, W):
    v = extract_valid(z_ext, H, W).astype(jnp.float32)     # (N, H, W, 128)
    avg = jnp.mean(v, axis=(1, 2))
    mx = jnp.max(v, axis=(1, 2))
    w1, w2 = ca["w1"], ca["w2"]                            # (16,128), (128,16) f32

    def fc(u):
        return jnp.maximum(u @ w1.T, 0.0) @ w2.T

    g = jax.nn.sigmoid(fc(avg) + fc(mx))                   # (N, 128)
    return g[:, None, :]                                   # (N, 1, 128) f32


# --------------------------------------------------------------------------
# Module forward passes
# --------------------------------------------------------------------------
def dense_residual_block(x_ext, blocks, H, W, last_extra_res=None):
    srcs = [x_ext]
    for i in range(4):                                     # b1..b4 (LeakyReLU)
        out = conv3x3(srcs, blocks[i], H, W, act="leaky_relu")
        srcs = srcs + [out]
    if last_extra_res is None:                             # b5: out*0.2 + x fused
        return conv3x3(srcs, blocks[4], H, W, act=None,
                       post_scale=RES_SCALE, src0_res_scale=1.0)
    # last DRB of an RRDB: fuse the full RRDB epilogue:
    #   0.2*(0.2*conv + drb_in) + x_rrdb + ca = 0.04*conv + 0.2*drb_in + x_rrdb + ca
    return conv3x3(srcs, blocks[4], H, W, act=None,
                   post_scale=RES_SCALE * RES_SCALE,
                   src0_res_scale=RES_SCALE, extra_res=last_extra_res)


def rrdb(z_ext, p, H, W):
    ca = channel_attention(z_ext, p["ca"], H, W)           # (N, 1, 128) f32 (additive, as in the module)
    h = dense_residual_block(z_ext, p["dense"][0], H, W)
    h = dense_residual_block(h, p["dense"][1], H, W)
    return dense_residual_block(
        h, p["dense"][2], H, W,
        last_extra_res=[(z_ext, 1.0, False), (ca, 1.0, True)])


def generator_forward(x_nchw, params):
    N, C_in, H, W = x_nchw.shape
    x = jnp.transpose(x_nchw, (0, 2, 3, 1)).astype(jnp.bfloat16)   # NCHW -> NHWC
    x = jnp.pad(x, ((0, 0), (0, 0), (0, 0), (0, 128 - C_in)))      # channel pad 3 -> 128
    x_ext = to_ext_flat(x, "reflect")

    out1 = conv3x3([x_ext], params["conv1"], H, W, act=None)
    out = out1
    for p in params["res_blocks"]:
        out = rrdb(out, p, H, W)

    # conv2 (reflect pad) with `out1 + out2` fused into the kernel epilogue
    conv2_src = to_ext_flat(extract_valid(out, H, W), "reflect")
    out = conv3x3([conv2_src], params["conv2"], H, W, act=None,
                  extra_res=[(out1, 1.0, False)])

    # upsampling: the zero-pad conv consumes the ext-flat zero-border tensor directly
    cur = None
    ups = params["upsampling"]
    if not ups:
        cur = extract_valid(out, H, W)
    for i, pk in enumerate(ups):
        src = out if i == 0 else to_ext_flat(cur, "zero")
        up = conv3x3([src], pk, H, W, act="leaky_relu")            # (N, P_ext, 512)
        # TODO(synk): fold PixelShuffle into the conv output index_map.
        cur = pixel_shuffle(extract_valid(up, H, W), 2)            # (N, 2H, 2W, 128)
        H, W = H * 2, W * 2

    a = conv3x3([to_ext_flat(cur, "reflect")], params["conv3a"], H, W,
                act="leaky_relu")
    b = conv3x3([to_ext_flat(extract_valid(a, H, W), "reflect")],
                params["conv3b"], H, W, act=None, out_dtype=jnp.float32)
    y = extract_valid(b, H, W)[..., :params["conv3b"]["cout"]]     # (N, H, W, 3) f32
    return jnp.transpose(y, (0, 3, 1, 2))                          # NHWC -> NCHW


# --------------------------------------------------------------------------
# Parameter init (torch-layout shapes) + one-time packing for Pallas
# --------------------------------------------------------------------------
def _conv_init(key, c_out, c_in, k, bias=True):
    kw, kb = jax.random.split(key)
    fan_in = c_in * k * k
    w = jax.random.normal(kw, (c_out, c_in, k, k), jnp.float32) / jnp.sqrt(fan_in)
    b = (jax.random.normal(kb, (c_out,), jnp.float32) * 0.01
         if bias else jnp.zeros((c_out,), jnp.float32))
    return w, b


def init_generator_params(key, channels, filters, num_res_blocks, num_upsample,
                          num_features, ca_ratio=8):
    def nk():
        nonlocal key
        key, sub = jax.random.split(key)
        return sub

    params = {"conv1": _conv_init(nk(), filters, channels, 3)}
    res_blocks = []
    for _ in range(num_res_blocks):
        dense = []
        for _ in range(3):
            drb = [_conv_init(nk(), filters, (i + 1) * filters, 3) for i in range(5)]
            dense.append(drb)
        ca = {
            "w1": _conv_init(nk(), num_features // ca_ratio, num_features, 1, bias=False)[0],
            "w2": _conv_init(nk(), num_features, num_features // ca_ratio, 1, bias=False)[0],
        }
        res_blocks.append({"dense": dense, "ca": ca})
    params["res_blocks"] = res_blocks
    params["conv2"] = _conv_init(nk(), filters, filters, 3)
    params["upsampling"] = [_conv_init(nk(), filters * 4, filters, 3)
                            for _ in range(num_upsample)]
    params["conv3a"] = _conv_init(nk(), filters, filters, 3)
    params["conv3b"] = _conv_init(nk(), channels, filters, 3)
    return params


def _pack_conv(w, b):
    """Torch (Cout,Cin,3,3) -> per-(source, tap) bf16 weights (S,9,128,Coutp) + f32 bias."""
    cout, cin, kh, kw = w.shape
    coutp = _round_up(cout, 128)
    cinp = _round_up(cin, 128)
    S = cinp // 128
    wt = jnp.transpose(w, (2, 3, 1, 0))                           # (3,3,cin,cout)
    wt = jnp.pad(wt, ((0, 0), (0, 0), (0, cinp - cin), (0, coutp - cout)))
    wt = wt.reshape(3, 3, S, 128, coutp)
    wt = jnp.transpose(wt, (2, 0, 1, 3, 4)).reshape(S, 9, 128, coutp)
    bp = jnp.pad(b.astype(jnp.float32), (0, coutp - cout)).reshape(1, coutp)
    return {"w": wt.astype(jnp.bfloat16), "b": bp, "cout": cout,
            "coutp": coutp, "S": S}


def prepare_params(raw):
    """One-time weight preprocessing (reorder / pad / bf16 cast), outside jit."""
    p = {"conv1": _pack_conv(*raw["conv1"]),
         "conv2": _pack_conv(*raw["conv2"]),
         "conv3a": _pack_conv(*raw["conv3a"]),
         "conv3b": _pack_conv(*raw["conv3b"]),
         "upsampling": [_pack_conv(w, b) for (w, b) in raw["upsampling"]]}
    res_blocks = []
    for rb in raw["res_blocks"]:
        dense = [[_pack_conv(w, b) for (w, b) in drb] for drb in rb["dense"]]
        ca = {"w1": rb["ca"]["w1"][:, :, 0, 0].astype(jnp.float32),
              "w2": rb["ca"]["w2"][:, :, 0, 0].astype(jnp.float32)}
        res_blocks.append({"dense": dense, "ca": ca})
    p["res_blocks"] = res_blocks
    return p


# --------------------------------------------------------------------------
if __name__ == "__main__":
    # filters must equal the module's hard-coded num_features (=128).
    channels, filters = 3, 128
    num_res_blocks, num_upsample = 1, 1               # small test configuration
    N, H, W = 2, 8, 8

    key = jax.random.PRNGKey(0)
    pkey, xkey, ckey, wkey = jax.random.split(key, 4)
    raw_params = init_generator_params(pkey, channels, filters, num_res_blocks,
                                       num_upsample, num_features=128)
    packed = prepare_params(raw_params)               # one-time, outside jit
    x = jax.random.normal(xkey, (N, channels, H, W), jnp.float32)  # NCHW input

    # ---- single-conv sanity check of the fused Pallas conv vs lax.conv -----
    xc = jax.random.normal(ckey, (N, H, W, filters), jnp.float32).astype(jnp.bfloat16)
    wc, bc = _conv_init(wkey, filters, filters, 3)
    pk_chk = _pack_conv(wc, bc)
    got = extract_valid(
        conv3x3([to_ext_flat(xc, "zero")], pk_chk, H, W, act=None,
                out_dtype=jnp.float32), H, W)
    ref = jax.lax.conv_general_dilated(
        xc, jnp.transpose(wc, (2, 3, 1, 0)).astype(jnp.bfloat16),
        (1, 1), "SAME", dimension_numbers=("NHWC", "HWIO", "NHWC"),
        preferred_element_type=jnp.float32) + bc[None, None, None, :]
    err = float(jnp.max(jnp.abs(got - ref)))
    assert err < 2e-2, f"conv3x3 mismatch vs lax.conv reference: {err}"

    # ---- full generator forward --------------------------------------------
    fwd = jax.jit(lambda inp: generator_forward(inp, packed))
    out = fwd(x)
    jax.block_until_ready(out)

    expected = (N, channels, H * (2 ** num_upsample), W * (2 ** num_upsample))
    assert out.shape == expected, (out.shape, expected)
    assert bool(jnp.isfinite(out).all())
    print("KERNEL_OK")
</pallas_src>

<mosaic_0001>
module attributes {stable_mosaic.version = 11 : i64} {
  func.func @_conv_kernel(%arg0: i32, %arg1: memref<1x9x128x128xbf16, #tpu.memory_space<vmem>>, %arg2: memref<1x128xf32, #tpu.memory_space<vmem>>, %arg3: memref<100x1xf32, #tpu.memory_space<vmem>>, %arg4: memref<1x122x128xbf16, #tpu.memory_space<vmem>>, %arg5: memref<1x122x128xf32, #tpu.memory_space<vmem>>) attributes {dimension_semantics = [#tpu.dimension_semantics<parallel>], iteration_bounds = array<i64: 2>, scalar_prefetch = 0 : i64, scratch_operands = 0 : i64, tpu.core_type = #tpu.core_type<tc>, window_params = [{pipeline_mode = #tpu.pipeline_mode<synchronous>, transform_indices = @transform_0, window_bounds = array<i64: 1, 9, 128, 128>}, {pipeline_mode = #tpu.pipeline_mode<synchronous>, transform_indices = @transform_1, window_bounds = array<i64: 1, 128>}, {pipeline_mode = #tpu.pipeline_mode<synchronous>, transform_indices = @transform_2, window_bounds = array<i64: 100, 1>}, {transform_indices = @transform_3, window_bounds = array<i64: 1, 122, 128>}, {transform_indices = @transform_4, window_bounds = array<i64: 1, 122, 128>}]} {
    %c0 = arith.constant 0 : index
    %c0_0 = arith.constant 0 : index
    %c0_1 = arith.constant 0 : index
    %0 = vector.load %arg4[%c0, %c0_0, %c0_1] : memref<1x122x128xbf16, #tpu.memory_space<vmem>>, vector<1x100x128xbf16>
    %1 = vector.shape_cast %0 : vector<1x100x128xbf16> to vector<100x128xbf16>
    %c0_2 = arith.constant 0 : index
    %c0_3 = arith.constant 0 : index
    %c0_4 = arith.constant 0 : index
    %c0_5 = arith.constant 0 : index
    %2 = vector.load %arg1[%c0_2, %c0_3, %c0_4, %c0_5] : memref<1x9x128x128xbf16, #tpu.memory_space<vmem>>, vector<1x1x128x128xbf16>
    %3 = vector.shape_cast %2 : vector<1x1x128x128xbf16> to vector<128x128xbf16>
    %cst = arith.constant dense<0.000000e+00> : vector<100x128xf32>
    %4 = tpu.matmul %1, %3, %cst {dimension_numbers = #tpu.dot_dimension_numbers<[1], [0], [0], [1], [0, 0, 1, 1], [], []>} : vector<100x128xbf16>, vector<128x128xbf16>, vector<100x128xf32> -> vector<100x128xf32>
    %c0_6 = arith.constant 0 : index
    %c1 = arith.constant 1 : index
    %c0_7 = arith.constant 0 : index
    %5 = vector.load %arg4[%c0_6, %c1, %c0_7] : memref<1x122x128xbf16, #tpu.memory_space<vmem>>, vector<1x100x128xbf16>
    %6 = vector.shape_cast %5 : vector<1x100x128xbf16> to vector<100x128xbf16>
    %c0_8 = arith.constant 0 : index
    %c1_9 = arith.constant 1 : index
    %c0_10 = arith.constant 0 : index
    %c0_11 = arith.constant 0 : index
    %7 = vector.load %arg1[%c0_8, %c1_9, %c0_10, %c0_11] : memref<1x9x128x128xbf16, #tpu.memory_space<vmem>>, vector<1x1x128x128xbf16>
    %8 = vector.shape_cast %7 : vector<1x1x128x128xbf16> to vector<128x128xbf16>
    %cst_12 = arith.constant dense<0.000000e+00> : vector<100x128xf32>
    %9 = tpu.matmul %6, %8, %cst_12 {dimension_numbers = #tpu.dot_dimension_numbers<[1], [0], [0], [1], [0, 0, 1, 1], [], []>} : vector<100x128xbf16>, vector<128x128xbf16>, vector<100x128xf32> -> vector<100x128xf32>
    %10 = arith.addf %4, %9 : vector<100x128xf32>
    %c0_13 = arith.constant 0 : index
    %c2 = arith.constant 2 : index
    %c0_14 = arith.constant 0 : index
    %11 = vector.load %arg4[%c0_13, %c2, %c0_14] : memref<1x122x128xbf16, #tpu.memory_space<vmem>>, vector<1x100x128xbf16>
    %12 = vector.shape_cast %11 : vector<1x100x128xbf16> to vector<100x128xbf16>
    %c0_15 = arith.constant 0 : index
    %c2_16 = arith.constant 2 : index
    %c0_17 = arith.constant 0 : index
    %c0_18 = arith.constant 0 : index
    %13 = vector.load %arg1[%c0_15, %c2_16, %c0_17, %c0_18] : memref<1x9x128x128xbf16, #tpu.memory_space<vmem>>, vector<1x1x128x128xbf16>
    %14 = vector.shape_cast %13 : vector<1x1x128x128xbf16> to vector<128x128xbf16>
    %cst_19 = arith.constant dense<0.000000e+00> : vector<100x128xf32>
    %15 = tpu.matmul %12, %14, %cst_19 {dimension_numbers = #tpu.dot_dimension_numbers<[1], [0], [0], [1], [0, 0, 1, 1], [], []>} : vector<100x128xbf16>, vector<128x128xbf16>, vector<100x128xf32> -> vector<100x128xf32>
    %16 = arith.addf %10, %15 : vector<100x128xf32>
    %c0_20 = arith.constant 0 : index
    %c10 = arith.constant 10 : index
    %c0_21 = arith.constant 0 : index
    %17 = vector.load %arg4[%c0_20, %c10, %c0_21] : memref<1x122x128xbf16, #tpu.memory_space<vmem>>, vector<1x100x128xbf16>
    %18 = vector.shape_cast %17 : vector<1x100x128xbf16> to vector<100x128xbf16>
    %c0_22 = arith.constant 0 : index
    %c3 = arith.constant 3 : index
    %c0_23 = arith.constant 0 : index
    %c0_24 = arith.constant 0 : index
    %19 = vector.load %arg1[%c0_22, %c3, %c0_23, %c0_24] : memref<1x9x128x128xbf16, #tpu.memory_space<vmem>>, vector<1x1x128x128xbf16>
    %20 = vector.shape_cast %19 : vector<1x1x128x128xbf16> to vector<128x128xbf16>
    %cst_25 = arith.constant dense<0.000000e+00> : vector<100x128xf32>
    %21 = tpu.matmul %18, %20, %cst_25 {dimension_numbers = #tpu.dot_dimension_numbers<[1], [0], [0], [1], [0, 0, 1, 1], [], []>} : vector<100x128xbf16>, vector<128x128xbf16>, vector<100x128xf32> -> vector<100x128xf32>
    %22 = arith.addf %16, %21 : vector<100x128xf32>
    %c0_26 = arith.constant 0 : index
    %c11 = arith.constant 11 : index
    %c0_27 = arith.constant 0 : index
    %23 = vector.load %arg4[%c0_26, %c11, %c0_27] : memref<1x122x128xbf16, #tpu.memory_space<vmem>>, vector<1x100x128xbf16>
    %24 = vector.shape_cast %23 : vector<1x100x128xbf16> to vector<100x128xbf16>
    %c0_28 = arith.constant 0 : index
    %c4 = arith.constant 4 : index
    %c0_29 = arith.constant 0 : index
    %c0_30 = arith.constant 0 : index
    %25 = vector.load %arg1[%c0_28, %c4, %c0_29, %c0_30] : memref<1x9x128x128xbf16, #tpu.memory_space<vmem>>, vector<1x1x128x128xbf16>
    %26 = vector.shape_cast %25 : vector<1x1x128x128xbf16> to vector<128x128xbf16>
    %cst_31 = arith.constant dense<0.000000e+00> : vector<100x128xf32>
    %27 = tpu.matmul %24, %26, %cst_31 {dimension_numbers = #tpu.dot_dimension_numbers<[1], [0], [0], [1], [0, 0, 1, 1], [], []>} : vector<100x128xbf16>, vector<128x128xbf16>, vector<100x128xf32> -> vector<100x128xf32>
    %28 = arith.addf %22, %27 : vector<100x128xf32>
    %c0_32 = arith.constant 0 : index
    %c12 = arith.constant 12 : index
    %c0_33 = arith.constant 0 : index
    %29 = vector.load %arg4[%c0_32, %c12, %c0_33] : memref<1x122x128xbf16, #tpu.memory_space<vmem>>, vector<1x100x128xbf16>
    %30 = vector.shape_cast %29 : vector<1x100x128xbf16> to vector<100x128xbf16>
    %c0_34 = arith.constant 0 : index
    %c5 = arith.constant 5 : index
    %c0_35 = arith.constant 0 : index
    %c0_36 = arith.constant 0 : index
    %31 = vector.load %arg1[%c0_34, %c5, %c0_35, %c0_36] : memref<1x9x128x128xbf16, #tpu.memory_space<vmem>>, vector<1x1x128x128xbf16>
    %32 = vector.shape_cast %31 : vector<1x1x128x128xbf16> to vector<128x128xbf16>
    %cst_37 = arith.constant dense<0.000000e+00> : vector<100x128xf32>
    %33 = tpu.matmul %30, %32, %cst_37 {dimension_numbers = #tpu.dot_dimension_numbers<[1], [0], [0], [1], [0, 0, 1, 1], [], []>} : vector<100x128xbf16>, vector<128x128xbf16>, vector<100x128xf32> -> vector<100x128xf32>
    %34 = arith.addf %28, %33 : vector<100x128xf32>
    %c0_38 = arith.constant 0 : index
    %c20 = arith.constant 20 : index
    %c0_39 = arith.constant 0 : index
    %35 = vector.load %arg4[%c0_38, %c20, %c0_39] : memref<1x122x128xbf16, #tpu.memory_space<vmem>>, vector<1x100x128xbf16>
    %36 = vector.shape_cast %35 : vector<1x100x128xbf16> to vector<100x128xbf16>
    %c0_40 = arith.constant 0 : index
    %c6 = arith.constant 6 : index
    %c0_41 = arith.constant 0 : index
    %c0_42 = arith.constant 0 : index
    %37 = vector.load %arg1[%c0_40, %c6, %c0_41, %c0_42] : memref<1x9x128x128xbf16, #tpu.memory_space<vmem>>, vector<1x1x128x128xbf16>
    %38 = vector.shape_cast %37 : vector<1x1x128x128xbf16> to vector<128x128xbf16>
    %cst_43 = arith.constant dense<0.000000e+00> : vector<100x128xf32>
    %39 = tpu.matmul %36, %38, %cst_43 {dimension_numbers = #tpu.dot_dimension_numbers<[1], [0], [0], [1], [0, 0, 1, 1], [], []>} : vector<100x128xbf16>, vector<128x128xbf16>, vector<100x128xf32> -> vector<100x128xf32>
    %40 = arith.addf %34, %39 : vector<100x128xf32>
    %c0_44 = arith.constant 0 : index
    %c21 = arith.constant 21 : index
    %c0_45 = arith.constant 0 : index
    %41 = vector.load %arg4[%c0_44, %c21, %c0_45] : memref<1x122x128xbf16, #tpu.memory_space<vmem>>, vector<1x100x128xbf16>
    %42 = vector.shape_cast %41 : vector<1x100x128xbf16> to vector<100x128xbf16>
    %c0_46 = arith.constant 0 : index
    %c7 = arith.constant 7 : index
    %c0_47 = arith.constant 0 : index
    %c0_48 = arith.constant 0 : index
    %43 = vector.load %arg1[%c0_46, %c7, %c0_47, %c0_48] : memref<1x9x128x128xbf16, #tpu.memory_space<vmem>>, vector<1x1x128x128xbf16>
    %44 = vector.shape_cast %43 : vector<1x1x128x128xbf16> to vector<128x128xbf16>
    %cst_49 = arith.constant dense<0.000000e+00> : vector<100x128xf32>
    %45 = tpu.matmul %42, %44, %cst_49 {dimension_numbers = #tpu.dot_dimension_numbers<[1], [0], [0], [1], [0, 0, 1, 1], [], []>} : vector<100x128xbf16>, vector<128x128xbf16>, vector<100x128xf32> -> vector<100x128xf32>
    %46 = arith.addf %40, %45 : vector<100x128xf32>
    %c0_50 = arith.constant 0 : index
    %c22 = arith.constant 22 : index
    %c0_51 = arith.constant 0 : index
    %47 = vector.load %arg4[%c0_50, %c22, %c0_51] : memref<1x122x128xbf16, #tpu.memory_space<vmem>>, vector<1x100x128xbf16>
    %48 = vector.shape_cast %47 : vector<1x100x128xbf16> to vector<100x128xbf16>
    %c0_52 = arith.constant 0 : index
    %c8 = arith.constant 8 : index
    %c0_53 = arith.constant 0 : index
    %c0_54 = arith.constant 0 : index
    %49 = vector.load %arg1[%c0_52, %c8, %c0_53, %c0_54] : memref<1x9x128x128xbf16, #tpu.memory_space<vmem>>, vector<1x1x128x128xbf16>
    %50 = vector.shape_cast %49 : vector<1x1x128x128xbf16> to vector<128x128xbf16>
    %cst_55 = arith.constant dense<0.000000e+00> : vector<100x128xf32>
    %51 = tpu.matmul %48, %50, %cst_55 {dimension_numbers = #tpu.dot_dimension_numbers<[1], [0], [0], [1], [0, 0, 1, 1], [], []>} : vector<100x128xbf16>, vector<128x128xbf16>, vector<100x128xf32> -> vector<100x128xf32>
    %52 = arith.addf %46, %51 : vector<100x128xf32>
    %c0_56 = arith.constant 0 : index
    %c0_57 = arith.constant 0 : index
    %53 = vector.load %arg2[%c0_56, %c0_57] : memref<1x128xf32, #tpu.memory_space<vmem>>, vector<1x128xf32>
    %54 = vector.broadcast %53 : vector<1x128xf32> to vector<100x128xf32>
    %55 = arith.addf %52, %54 : vector<100x128xf32>
    %c0_58 = arith.constant 0 : index
    %c0_59 = arith.constant 0 : index
    %56 = vector.load %arg3[%c0_58, %c0_59] : memref<100x1xf32, #tpu.memory_space<vmem>>, vector<100x1xf32>
    %57 = vector.broadcast %56 : vector<100x1xf32> to vector<100x128xf32>
    %58 = arith.mulf %55, %57 : vector<100x128xf32>
    %c0_60 = arith.constant 0 : index
    %c11_61 = arith.constant 11 : index
    %c0_62 = arith.constant 0 : index
    %59 = vector.load %arg5[%c0_60, %c11_61, %c0_62] : memref<1x122x128xf32, #tpu.memory_space<vmem>>, vector<1x100x128xf32>
    %60 = vector.shape_cast %59 : vector<1x100x128xf32> to vector<100x128xf32>
    %61 = vector.shape_cast %58 : vector<100x128xf32> to vector<1x100x128xf32>
    tpu.vector_store %arg5[%c0_60, %c11_61, %c0_62], %61 {strides = array<i32>} : memref<1x122x128xf32, #tpu.memory_space<vmem>>, vector<1x100x128xf32>,
    %cst_63 = arith.constant 0.000000e+00 : f32
    %62 = vector.broadcast %cst_63 : f32 to vector<11x128xf32>
    %c0_64 = arith.constant 0 : index
    %c0_65 = arith.constant 0 : index
    %c0_66 = arith.constant 0 : index
    %63 = vector.load %arg5[%c0_64, %c0_65, %c0_66] : memref<1x122x128xf32, #tpu.memory_space<vmem>>, vector<1x11x128xf32>
    %64 = vector.shape_cast %63 : vector<1x11x128xf32> to vector<11x128xf32>
    %65 = vector.shape_cast %62 : vector<11x128xf32> to vector<1x11x128xf32>
    tpu.vector_store %arg5[%c0_64, %c0_65, %c0_66], %65 {strides = array<i32>} : memref<1x122x128xf32, #tpu.memory_space<vmem>>, vector<1x11x128xf32>,
    %c0_67 = arith.constant 0 : index
    %c111 = arith.constant 111 : index
    %c0_68 = arith.constant 0 : index
    %66 = vector.load %arg5[%c0_67, %c111, %c0_68] : memref<1x122x128xf32, #tpu.memory_space<vmem>>, vector<1x11x128xf32>
    %67 = vector.shape_cast %66 : vector<1x11x128xf32> to vector<11x128xf32>
    %68 = vector.shape_cast %62 : vector<11x128xf32> to vector<1x11x128xf32>
    tpu.vector_store %arg5[%c0_67, %c111, %c0_68], %68 {strides = array<i32>} : memref<1x122x128xf32, #tpu.memory_space<vmem>>, vector<1x11x128xf32>,
    return
  }
  func.func @transform_0(%arg0: i32) -> (i32, i32, i32, i32) {
    %c0_i32 = arith.constant 0 : i32
    %c0_i32_0 = arith.constant 0 : i32
    %c0_i32_1 = arith.constant 0 : i32
    %c0_i32_2 = arith.constant 0 : i32
    %c0_i32_3 = arith.constant 0 : i32
    return %c0_i32, %c0_i32_0, %c0_i32_1, %c0_i32_2 : i32, i32, i32, i32
  }
  func.func @transform_1(%arg0: i32) -> (i32, i32) {
    %c0_i32 = arith.constant 0 : i32
    %c0_i32_0 = arith.constant 0 : i32
    %c0_i32_1 = arith.constant 0 : i32
    return %c0_i32, %c0_i32_0 : i32, i32
  }
  func.func @transform_2(%arg0: i32) -> (i32, i32) {
    %c0_i32 = arith.constant 0 : i32
    %c0_i32_0 = arith.constant 0 : i32
    %c0_i32_1 = arith.constant 0 : i32
    return %c0_i32, %c0_i32_0 : i32, i32
  }
  func.func @transform_3(%arg0: i32) -> (i32, i32, i32) {
    %c0_i32 = arith.constant 0 : i32
    %c0_i32_0 = arith.constant 0 : i32
    %c0_i32_1 = arith.constant 0 : i32
    return %arg0, %c0_i32, %c0_i32_0 : i32, i32, i32
  }
  func.func @transform_4(%arg0: i32) -> (i32, i32, i32) {
    %c0_i32 = arith.constant 0 : i32
    %c0_i32_0 = arith.constant 0 : i32
    %c0_i32_1 = arith.constant 0 : i32
    return %arg0, %c0_i32, %c0_i32_0 : i32, i32, i32
  }
}

</mosaic_0001>

<bundles_post_ra>
// kernel: tpu_custom_call.1
= control target key start
LH: loop header
LB: loop body
LE: loop exit
PB: predicated region body
PF: predicated region fallthrough
CT: control target
= control target key end

     0   :  { %9 = vsyncpa [#allocation3], 0  ;;  %s2604_s15 = smov 0   ;;  %s2993_s0 = inlined_call_operand.hbm [shape: bf16[1,9,128,128], index: 0, kind: input, shape index: {}]   ;;  %s2994_s1 = inlined_call_operand.vmem [shape: f32[1,128], index: 1, kind: input, shape index: {}]   ;;  %s2995_s2 = inlined_call_operand.vmem [shape: f32[100,1], index: 2, kind: input, shape index: {}]   ;;  %s2996_s3 = inlined_call_operand.vmem [shape: bf16[2,122,128], index: 3, kind: input, shape index: {}]   ;;  %s2997_s4 = inlined_call_operand.vmem [shape: f32[2,122,128], index: 4, kind: output, shape index: {}]  }
   0x1 LB: > { %s146_s18 = sshll.u32 %s2993_s0, 4  ;;  %s1989_s19 = sadd.s32 4294967295, %s2572_s15   ;;  %s2572_s15 = sphi %s2604_s15, %s15_s15   ;;  %s147_s18 = int_to_ptr.hbm [resolvable:$true] %s146_s18 }
   0x2   : > { %p1991_p0 = scmp.ge.s32.totalorder %s2572_s15, 1  ;;  %p135_p1 = scmp.lt.s32.totalorder %s2572_s15, 3 }
   0x3   : > { %p2513_p2 = scmp.eq.s32.totalorder %s1989_s19, 0  ;;  %s2574_s20 = smov [#allocation2]  }
   0x4   : > { %p136_p3 = pnand %p1991_p0, %p135_p1  ;;  %s148_s21 = sshll.u32 %s2574_s20, 4  ;;  %s149_s21 = int_to_ptr.vmem [resolvable:$true] %s148_s21 }
   0x5   : > { %s2575_s22 = smov 64   ;;  %s2576_s23 = smov 4  }
   0x6   : > { %p2509_p4 = pneg %p136_p3  ;;  %178 = sbr.rel (%p136_p3) target bundleno = 427 (0x1ab), region = 36 }
   0x8   : > { %p2510_p5 = pnand %p2513_p2, %p2509_p4 }
   0xa   : > { %2512 = dma.hbm_to_vmem [thread:$0]  (!%p2510_p5), %s147_s18, 9216, %s149_s21, [#allocation3], %s2575_s22, %s2575_s22, %s2576_s23  }
   0xb   : > { %2567 = dma.done.wait (%p2513_p2), [#allocation3], 9216  }
   0xc   : > { %2569 = vsyncadd (%p2513_p2), [#allocation3], 4294958080  ;;  %v2400_v0 = vld [vmem:[#allocation2 + $0x78] sm:$0xff]  ;;  %p205_p6 = scmp.lt.s32.totalorder %s1989_s19, 1  ;;  %v2399_v1 = vld [vmem:[#allocation2 + $0x70] sm:$0xff]  ;;  %vm571_vm1 = vcmask 1046528  }
   0xd   : > { %2481 = vmatpush.bf16.msra.mxu1 %v2400_v0  ;;  %2482 = vmatpush.bf16.msra.mxu2 %v2400_v0  ;;  %v2398_v2 = vld [vmem:[#allocation2 + $0x68] sm:$0xff]  ;;  %v2397_v3 = vld [vmem:[#allocation2 + $0x60] sm:$0xff]  ;;  %v2396_v5 = vld [vmem:[#allocation2 + $0x58] sm:$0xff]  ;;  %vm295_vm0 = vsmask.f32 7424  ;;  %vm1099_vm4 = vcmask 1045504  }
   0xe   : > { %2483 = vmatpush.bf16.msra.mxu3 %v2400_v0  ;;  %406 = vmatpush.bf16.msra.mxu0 %v2400_v0  ;;  %s2999_s19 = smov (!%p205_p6, %s1989_s19), 1  ;;  %v2395_v11 = vld [vmem:[#allocation2 + $0x50] sm:$0xff]  ;;  %v2394_v20 = vld [vmem:[#allocation2 + $0x48] sm:$0xff]  ;;  %v2393_v29 = vld [vmem:[#allocation2 + $0x40] sm:$0xff]  ;;  %vm904_vm2 = vsmask.f32 6400 }
   0xf   : > { %s2378_s24 = sshll.u32 %s2999_s19, 6  ;;  %v2421_v38 = vld [vmem:[#allocation2 + $0xf8] sm:$0xff]  ;;  %v2420_v46 = vld [vmem:[#allocation2 + $0xf0] sm:$0xff]  ;;  %v2419_v50 = vld [vmem:[#allocation2 + $0xe8] sm:$0xff]  ;;  %vm1477_vm3 = vsmask.f32 5376 }
  0x10   : > { %s2621_s27 = scalar_lea.vmem %s2996_s3, %s2378_s24  ;;  %v2408_v39 = vld [vmem:[#allocation2 + $0xb8] sm:$0xff]  ;;  %v2407_v47 = vld [vmem:[#allocation2 + $0xb0] sm:$0xff]  ;;  %v2406_v51 = vld [vmem:[#allocation2 + $0xa8] sm:$0xff]  ;;  %vm1672_vm5 = vcmask 1044480   ;;  %s2379_s30 = sshll.u32 %s2999_s19, 7 }
  0x11   : > { %2484 = vmatpush.bf16.msra.mxu1 %v2399_v1  ;;  %2485 = vmatpush.bf16.msra.mxu2 %v2399_v1  ;;  %v244_v4 = vld [vmem:[%s2621_s27 + $0x30] sm:$0x7]  ;;  %v2628_v7 = vld [vmem:[%s2621_s27 + $0x20] sm:$0xff]  ;;  %v2634_v10 = vld [vmem:[%s2621_s27 + $0x18] sm:$0xff]  ;;  %s2934_s7 = scalar_lea.vmem %s2997_s4, %s2379_s30 }
  0x12   : > { %2486 = vmatpush.bf16.msra.mxu3 %v2399_v1  ;;  %407 = vmatpush.bf16.msra.mxu0 %v2399_v1  ;;  %v2625_v6 = vld [vmem:[%s2621_s27 + $0x10] sm:$0xff]  ;;  %v287_v8 = vunpack.c.l.b16 %v244_v4  ;;  %v2631_v9 = vld [vmem:[%s2621_s27] sm:$0xff]   ;;  %v2638_v13 = vld [vmem:[%s2621_s27 + $0x28] sm:$0xff]  ;;  %v328_v14 = vshll.u32 %v2628_v7, 16  ;;  %v320_v19 = vshll.u32 %v2634_v10, 16  ;;  %v332_v23 = vshrl.u32 %v2628_v7, 16 }
  0x13   : > { %v312_v12 = vshll.u32 %v2625_v6, 16  ;;  %v2642_v15 = vld [vmem:[%s2621_s27 + $0x8] sm:$0xff]  ;;  %v299_v16 = vshll.u32 %v2631_v9, 16  ;;  %v316_v18 = vshrl.u32 %v2625_v6, 16  ;;  %v336_v24 = vshll.u32 %v2638_v13, 16  ;;  %v2392_v42 = vld [vmem:[#allocation2 + $0x38] sm:$0xff] }
  0x14   : > { %v2645_v17 = vpack.c.b16 %v287_v8, %v287_v8  ;;  %v2651_v22 = vrot.slane %v328_v14, 1  ;;  %v297_v25 = vshrl.u32 %v2631_v9, 16  ;;  %v304_v27 = vshll.u32 %v2642_v15, 16  ;;  %v2429_v44 = vld [vmem:[#allocation2 + $0x138] sm:$0xff]  ;;  %v2391_v48 = vld [vmem:[#allocation2 + $0x30] sm:$0xff]  ;;  %v2390_v52 = vld [vmem:[#allocation2 + $0x28] sm:$0xff] }
  0x15   : > { %2487 = vmatpush.bf16.msra.mxu1 %v2398_v2  ;;  %2488 = vmatpush.bf16.msra.mxu2 %v2398_v2  ;;  %v2649_v21 = vrot.slane %v312_v12, 1  ;;  %v301_v26 = vrot.slane %v299_v16, 1  ;;  %v322_v31 = vrot.slane %v320_v19, 1  ;;  %v338_v33 = vrot.slane %v336_v24, 1  ;;  %v2428_v49 = vld [vmem:[#allocation2 + $0x130] sm:$0xff]  ;;  %v2418_v55 = vld [vmem:[#allocation2 + $0xe0] sm:$0xff] }
  0x16   : > { %2489 = vmatpush.bf16.msra.mxu3 %v2398_v2  ;;  %408 = vmatpush.bf16.msra.mxu0 %v2398_v2  ;;  %v344_v28 = vshll.u32 %v2645_v17, 16  ;;  %v334_v32 = vor.u32 %v332_v23, %v2651_v22  ;;  %v306_v35 = vrot.slane %v304_v27, 1  ;;  %v348_v37 = vshrl.u32 %v2645_v17, 16  ;;  %v2427_v56 = vld [vmem:[#allocation2 + $0x128] sm:$0xff]  ;;  %v2405_v58 = vld [vmem:[#allocation2 + $0xa0] sm:$0xff]  ;;  %v2417_v4 = vld [vmem:[#allocation2 + $0xd8] sm:$0xff] }
  0x17   : > { %v318_v30 = vor.u32 %v316_v18, %v2649_v21  ;;  %v302_v34 = vor.u32 %v301_v26, %v297_v25  ;;  %v324_v53 = vshrl.u32 %v2634_v10, 16  ;;  %v340_v54 = vshrl.u32 %v2638_v13, 16  ;;  %v696_v59 = vld [vmem:[%s2621_s27 + $0x4] sm:$0xe]  ;;  %v2669_v60 = vld [vmem:[%s2621_s27 + $0x8] sm:$0xff]   ;;  %v2388_v12 = vld [vmem:[#allocation2 + $0x18] sm:$0xff] }
  0x18   : > { %v346_v36 = vrot.slane %v344_v28, 1  ;;  %v339_v41 = vsel %vm295_vm0, %v334_v32, %v338_v33  ;;  %v308_v57 = vshrl.u32 %v2642_v15, 16  ;;  %v2389_v61 = vld [vmem:[#allocation2 + $0x20] sm:$0xff]  ;;  %v739_v2 = vunpack.c.l.b16 %v696_v59  ;;  %v2425_v16 = vld [vmem:[#allocation2 + $0x118] sm:$0xff]  ;;  %v2678_v18 = vld [vmem:[%s2621_s27 + $0xc] sm:$0xff] }
  0x19   : > { %2490 = vmatpush.bf16.msra.mxu1 %v2397_v3  ;;  %2491 = vmatpush.bf16.msra.mxu2 %v2397_v3  ;;  %v323_v40 = vsel %vm295_vm0, %v318_v30, %v322_v31  ;;  %v307_v43 = vsel %vm295_vm0, %v302_v34, %v306_v35  ;;  %v326_v62 = vor.u32 %v324_v53, %v322_v31  ;;  %v2426_v0 = vld [vmem:[#allocation2 + $0x120] sm:$0xff]  ;;  %v2403_v23 = vld [vmem:[#allocation2 + $0x90] sm:$0xff]  ;;  %v914_v28 = vshrl.u32 %v2678_v18, 16  ;;  %v2415_v30 = vld [vmem:[#allocation2 + $0xc8] sm:$0xff] }
  0x1a   : > { %2492 = vmatpush.bf16.msra.mxu3 %v2397_v3  ;;  %409 = vmatpush.bf16.msra.mxu0 %v2397_v3  ;;  %v350_v45 = vor.u32 %v348_v37, %v346_v36  ;;  %v342_v63 = vor.u32 %v340_v54, %v338_v33  ;;  %v310_v1 = vor.u32 %v308_v57, %v306_v35  ;;  %v740_v3 = vunpack.c.l.b16 %v2669_v60  ;;  %v2424_v24 = vld [vmem:[#allocation2 + $0x110] sm:$0xff]  ;;  %v2478_v25 = vld [vmem:[%s2621_s27] sm:$0xf0]  ;;  %v2402_v31 = vld [vmem:[#allocation2 + $0x88] sm:$0xff] }
  0x1b   : > { %v331_v8 = vsel %vm295_vm0, %v326_v62, %v2651_v22  ;;  %v2387_v22 = vld [vmem:[#allocation2 + $0x10] sm:$0xff]  ;;  %v2386_v32 = vld [vmem:[#allocation2 + $0x8] sm:$0xff]  ;;  %v916_v37 = vrot.slane %v914_v28, 1  ;;  %v2473_v53 = vld [vmem:[#allocation2 + $0x238] sm:$0xff] }
  0x1c   : > { %v315_v14 = vsel %vm295_vm0, %v310_v1, %v2649_v21  ;;  %v752_v19 = vpack.c.b16 %v740_v3, %v739_v2  ;;  %v2479_v21 = vld [vmem:[%s2621_s27] sm:$0xe]  ;;  %v2423_v34 = vld [vmem:[#allocation2 + $0x108] sm:$0xff]  ;;  %v2692_v57 = vld [vmem:[%s2621_s27 + $0x14] sm:$0xff] }
  0x1d   : > { %2493 = vmatpush.bf16.msra.mxu1 %v2396_v5  ;;  %2494 = vmatpush.bf16.msra.mxu2 %v2396_v5  ;;  %v2480_v33 = vor.u32 %v2479_v21, %v2478_v25  ;;  %v2436_v59 = vld [vmem:[#allocation2 + $0x170] sm:$0xff]  ;;  %v2449_v62 = vld [vmem:[#allocation2 + $0x1a8] sm:$0xff]  ;;  %v2470_v25 = vld [vmem:[#allocation2 + $0x220] sm:$0xff] }
  0x1e   : > { %2495 = vmatpush.bf16.msra.mxu3 %v2396_v5  ;;  %410 = vmatpush.bf16.msra.mxu0 %v2396_v5  ;;  %v2404_v5 = vld [vmem:[#allocation2 + $0x98] sm:$0xff]  ;;  %v906_v26 = vshrl.u32 %v752_v19, 16  ;;  %v909_v27 = vshll.u32 %v752_v19, 16  ;;  %v2463_v1 = vld [vmem:[#allocation2 + $0x1e8] sm:$0xff] }
  0x1f   : > { %v2435_v2 = vld [vmem:[#allocation2 + $0x168] sm:$0xff]  ;;  %v2447_v21 = vld [vmem:[#allocation2 + $0x198] sm:$0xff] }
  0x20   : > { %v908_v35 = vrot.slane %v906_v26, 1  ;;  %v2461_v26 = vld [vmem:[#allocation2 + $0x1d8] sm:$0xff] }
  0x21   : > { %2496 = vmatpush.bf16.msra.mxu1 %v2395_v11  ;;  %2497 = vmatpush.bf16.msra.mxu2 %v2395_v11 }
  0x22   : > { %2498 = vmatpush.bf16.msra.mxu3 %v2395_v11  ;;  %411 = vmatpush.bf16.msra.mxu0 %v2395_v11  ;;  %v347_v11 = vsel %vm295_vm0, %v342_v63, %v346_v36  ;;  %v911_v36 = vrot.slane %v909_v27, 2  ;;  %v923_v63 = vshrl.u32 %v2692_v57, 16 }
  0x25   : > { %2499 = vmatpush.bf16.msra.mxu1 %v2394_v20  ;;  %2500 = vmatpush.bf16.msra.mxu2 %v2394_v20 }
  0x26   : > { %2501 = vmatpush.bf16.msra.mxu3 %v2394_v20  ;;  %412 = vmatpush.bf16.msra.mxu0 %v2394_v20  ;;  %v2416_v20 = vld [vmem:[#allocation2 + $0xd0] sm:$0xff] }
  0x29   : > { %2502 = vmatpush.bf16.msra.mxu1 %v2393_v29  ;;  %2503 = vmatpush.bf16.msra.mxu2 %v2393_v29 }
  0x2a   : > { %2504 = vmatpush.bf16.msra.mxu3 %v2393_v29  ;;  %413 = vmatpush.bf16.msra.mxu0 %v2393_v29  ;;  %v917_v29 = vshll.u32 %v2678_v18, 16 }
  0x2c   : > { %424 = vmatmul.bf16.vlgmr.msra.gmra.mxu1 %v323_v40  ;;  %434 = vmatmul.bf16.vlgmr.msra.gmra.mxu2 %v339_v41  ;;  %v2401_v40 = vld [vmem:[#allocation2 + $0x80] sm:$0xff]  ;;  %v759_v41 = vrot.slane %v752_v19, 1 }
  0x2d   : > { %640 = vmatpush.bf16.msrb.mxu2 %v2408_v39  ;;  %414 = vmatmul.bf16.vlgmr.msra.gmra.mxu0 %v307_v43  ;;  %v2414_v39 = vld [vmem:[#allocation2 + $0xc0] sm:$0xff]  ;;  %v2451_v43 = vld [vmem:[#allocation2 + $0x1b8] sm:$0xff] }
  0x2e   : > { %827 = vmatpush.bf16.msrb.mxu3 %v2421_v38  ;;  %507 = vmatpush.bf16.msrb.mxu1 %v2392_v42  ;;  %v919_v38 = vrot.slane %v917_v29, 2  ;;  %v760_v42 = vrot.slane %v2678_v18, 1  ;;  %v2433_v29 = vld [vmem:[#allocation2 + $0x158] sm:$0xff] }
  0x2f   : > { %1022 = vmatpush.bf16.msrb.mxu0 %v2429_v44  ;;  %444 = vmatmul.bf16.vlgmr.msra.gmra.mxu3 %v350_v45  ;;  %v2465_v44 = vld [vmem:[#allocation2 + $0x1f8] sm:$0xff]  ;;  %v2385_v45 = vld [vmem:[#allocation2] sm:$0xff] }
  0x31   : > { %641 = vmatpush.bf16.msrb.mxu2 %v2407_v47  ;;  %v573_v47 = vrot.slane %v2642_v15, 1 }
  0x32   : > { %828 = vmatpush.bf16.msrb.mxu3 %v2420_v46  ;;  %508 = vmatpush.bf16.msrb.mxu1 %v2391_v48  ;;  %v572_v46 = vrot.slane %v2480_v33, 1  ;;  %v2422_v48 = vld [vmem:[#allocation2 + $0x100] sm:$0xff] }
  0x33   : > { %1023 = vmatpush.bf16.msrb.mxu0 %v2428_v49  ;;  %v912_v49 = vor.u32 %v911_v36, %v908_v35 }
  0x34   : > { %v574_v54 = vsel %vm571_vm1, %v572_v46, %v573_v47 }
  0x35   : > { %642 = vmatpush.bf16.msrb.mxu2 %v2406_v51  ;;  %v761_v51 = vsel %vm571_vm1, %v759_v41, %v760_v42 }
  0x36   : > { %829 = vmatpush.bf16.msrb.mxu3 %v2419_v50  ;;  %509 = vmatpush.bf16.msrb.mxu1 %v2390_v52  ;;  %v920_v50 = vor.u32 %v919_v38, %v916_v37  ;;  %v2437_v52 = vld [vmem:[#allocation2 + $0x178] sm:$0xff]  ;;  %v2714_v37 = vld [vmem:[%s2621_s27 + $0x24] sm:$0xff] }
  0x37   : > { %1024 = vmatpush.bf16.msrb.mxu0 %v2427_v56  ;;  %v2469_v38 = vld [vmem:[#allocation2 + $0x218] sm:$0xff]  ;;  %v941_v41 = vshrl.u32 %v2714_v37, 16  ;;  %v766_v46 = vrot.slane %v2714_v37, 1 }
  0x38   : > { %v921_v56 = vsel %vm904_vm2, %v912_v49, %v920_v50 }
  0x39   : > { %643 = vmatpush.bf16.msrb.mxu2 %v2405_v58  ;;  %v2464_v58 = vld [vmem:[#allocation2 + $0x1f0] sm:$0xff] }
  0x3a   : > { %830 = vmatpush.bf16.msrb.mxu3 %v2418_v55  ;;  %510 = vmatpush.bf16.msrb.mxu1 %v2389_v61  ;;  %v2450_v55 = vld [vmem:[#allocation2 + $0x1b0] sm:$0xff] }
  0x3b   : > { %1025 = vmatpush.bf16.msrb.mxu0 %v2426_v0  ;;  %v2472_v61 = vld [vmem:[#allocation2 + $0x230] sm:$0xff]  ;;  %v926_v0 = vshll.u32 %v2692_v57, 16 }
  0x3c   : > { %429 = vmatmul.bf16.gmra.mxu1 %v331_v8  ;;  %439 = vmatmul.bf16.gmra.mxu2 %v347_v11  ;;  %v925_v8 = vrot.slane %v923_v63, 1  ;;  %v2732_v63 = vld [vmem:[%s2621_s27 + $0x34] sm:$0xff]  }
  0x3d   : > { %644 = vmatpush.bf16.msrb.mxu2 %v2404_v5  ;;  %419 = vmatmul.bf16.gmra.mxu0 %v315_v14  ;;  %v2448_v5 = vld [vmem:[#allocation2 + $0x1a0] sm:$0xff]  ;;  %v928_v11 = vrot.slane %v926_v0, 2  ;;  %v575_v14 = vrot.slane %v2625_v6, 1 }
  0x3e   : > { %831 = vmatpush.bf16.msrb.mxu3 %v2417_v4  ;;  %511 = vmatpush.bf16.msrb.mxu1 %v2388_v12  ;;  %v2471_v4 = vld [vmem:[#allocation2 + $0x228] sm:$0xff]  ;;  %v762_v12 = vrot.slane %v2692_v57, 1 }
  0x3f   : > { %1026 = vmatpush.bf16.msrb.mxu0 %v2425_v16  ;;  %v929_v16 = vor.u32 %v928_v11, %v925_v8 }
  0x40   : > { %v763_v19 = vsel %vm571_vm1, %v760_v42, %v762_v12  ;;  %v944_v42 = vshll.u32 %v2714_v37, 16 }
  0x41   : > { %645 = vmatpush.bf16.msrb.mxu2 %v2403_v23  ;;  %v930_v23 = vsel %vm904_vm2, %v920_v50, %v929_v16 }
  0x42   : > { %832 = vmatpush.bf16.msrb.mxu3 %v2416_v20  ;;  %512 = vmatpush.bf16.msrb.mxu1 %v2387_v22  ;;  %v576_v20 = vsel %vm571_vm1, %v573_v47, %v575_v14  ;;  %v2703_v22 = vld [vmem:[%s2621_s27 + $0x1c] sm:$0xff] }
  0x43   : > { %1027 = vmatpush.bf16.msrb.mxu0 %v2424_v24  ;;  %v2434_v24 = vld [vmem:[#allocation2 + $0x160] sm:$0xff]  ;;  %v932_v27 = vshrl.u32 %v2703_v22, 16  ;;  %v935_v28 = vshll.u32 %v2703_v22, 16 }
  0x45   : > { %646 = vmatpush.bf16.msrb.mxu2 %v2402_v31  ;;  %v937_v31 = vrot.slane %v935_v28, 2 }
  0x46   : > { %833 = vmatpush.bf16.msrb.mxu3 %v2415_v30  ;;  %513 = vmatpush.bf16.msrb.mxu1 %v2386_v32  ;;  %v934_v30 = vrot.slane %v932_v27, 1  ;;  %v577_v32 = vrot.slane %v2634_v10, 1 }
  0x47   : > { %1028 = vmatpush.bf16.msrb.mxu0 %v2423_v34 }
  0x48   : > { %v938_v33 = vor.u32 %v937_v31, %v934_v30  ;;  %v578_v35 = vsel %vm571_vm1, %v575_v14, %v577_v32  ;;  %v2444_v14 = vld [vmem:[#allocation2 + $0x180] sm:$0xff] }
  0x49   : > { %647 = vmatpush.bf16.msrb.mxu2 %v2401_v40  ;;  %v2460_v40 = vld [vmem:[#allocation2 + $0x1d0] sm:$0xff] }
  0x4a   : > { %834 = vmatpush.bf16.msrb.mxu3 %v2414_v39  ;;  %514 = vmatpush.bf16.msrb.mxu1 %v2385_v45  ;;  %v939_v36 = vsel %vm904_vm2, %v929_v16, %v938_v33  ;;  %v2446_v39 = vld [vmem:[#allocation2 + $0x190] sm:$0xff]  ;;  %v946_v45 = vrot.slane %v944_v42, 2 }
  0x4b   : > { %1029 = vmatpush.bf16.msrb.mxu0 %v2422_v48 }
  0x4c   : > { %648 = vmatmul.bf16.vlgmr.msrb.gmra.mxu2 %v574_v54  ;;  %v2459_v54 = vld [vmem:[#allocation2 + $0x1c8] sm:$0xff] }
  0x4d   : > { %1355 = vmatpush.bf16.msra.mxu2 %v2451_v43  ;;  %835 = vmatmul.bf16.vlgmr.msrb.gmra.mxu3 %v761_v51  ;;  %v2432_v43 = vld [vmem:[#allocation2 + $0x150] sm:$0xff] }
  0x4e   : > { %1595 = vmatpush.bf16.msra.mxu3 %v2465_v44  ;;  %1168 = vmatpush.bf16.msra.mxu1 %v2437_v52  ;;  %v943_v44 = vrot.slane %v941_v41, 1  ;;  %v2725_v51 = vld [vmem:[%s2621_s27 + $0x2c] sm:$0xff] }
  0x4f   : > { %1741 = vmatpush.bf16.msra.mxu0 %v2473_v53  ;;  %515 = vmatmul.bf16.vlgmr.msrb.gmra.mxu1 %v2631_v9  ;;  %v2462_v9 = vld [vmem:[#allocation2 + $0x1e0] sm:$0xff]  ;;  %v2468_v52 = vld [vmem:[#allocation2 + $0x210] sm:$0xff]  ;;  %v2445_v53 = vld [vmem:[#allocation2 + $0x188] sm:$0xff] }
  0x50   : > { %1030 = vmatmul.bf16.vlgmr.msrb.gmra.mxu0 %v921_v56  ;;  %v947_v47 = vor.u32 %v946_v45, %v943_v44  ;;  %v950_v56 = vshrl.u32 %v2725_v51, 16  ;;  %v1651_v45 = vld [vmem:[%s2621_s27 + $0x8] sm:$0x8] }
  0x51   : > { %1356 = vmatpush.bf16.msra.mxu2 %v2450_v55  ;;  %v2431_v55 = vld [vmem:[#allocation2 + $0x148] sm:$0xff] }
  0x52   : > { %1596 = vmatpush.bf16.msra.mxu3 %v2464_v58  ;;  %1169 = vmatpush.bf16.msra.mxu1 %v2436_v59  ;;  %v948_v50 = vsel %vm904_vm2, %v938_v33, %v947_v47  ;;  %v953_v58 = vshll.u32 %v2725_v51, 16  ;;  %v952_v59 = vrot.slane %v950_v56, 1  ;;  %v1457_v33 = vunpack.c.h.b16 %v2669_v60  ;;  %v1814_v60 = vld [vmem:[%s2995_s2] sm:$0xff] }
  0x53   : > { %1742 = vmatpush.bf16.msra.mxu0 %v2472_v61 }
  0x54   : > { %v955_v61 = vrot.slane %v953_v58, 2 }
  0x55   : > { %1357 = vmatpush.bf16.msra.mxu2 %v2449_v62  ;;  %v768_v62 = vrot.slane %v2725_v51, 1 }
  0x56   : > { %1597 = vmatpush.bf16.msra.mxu3 %v2463_v1  ;;  %1170 = vmatpush.bf16.msra.mxu1 %v2435_v2  ;;  %v956_v0 = vor.u32 %v955_v61, %v952_v59  ;;  %v902_v1 = vunpack.c.l.b16 %v2732_v63  ;;  %v2439_v59 = vld [vmem:[%s2621_s27 + $0x10] sm:$0xff] }
  0x57   : > { %1743 = vmatpush.bf16.msra.mxu0 %v2471_v4  ;;  %v769_v2 = vsel %vm571_vm1, %v766_v46, %v768_v62  ;;  %v708_v4 = vld [vmem:[%s2621_s27 + $0x34] sm:$0x7] }
  0x58   : > { %v957_v8 = vsel %vm904_vm2, %v947_v47, %v956_v0  ;;  %v2740_v11 = vpack.c.b16 %v902_v1, %v902_v1  ;;  %v2438_v47 = vld [vmem:[%s2621_s27 + $0x8] sm:$0xf0] }
  0x59   : > { %1358 = vmatpush.bf16.msra.mxu2 %v2448_v5 }
  0x5a   : > { %1598 = vmatpush.bf16.msra.mxu3 %v2462_v9  ;;  %1171 = vmatpush.bf16.msra.mxu1 %v2434_v24  ;;  %v2467_v9 = vld [vmem:[#allocation2 + $0x208] sm:$0xff]  ;;  %v959_v16 = vshrl.u32 %v2740_v11, 16 }
  0x5b   : > { %1744 = vmatpush.bf16.msra.mxu0 %v2470_v25 }
  0x5c   : > { %653 = vmatmul.bf16.gmra.mxu2 %v576_v20  ;;  %v961_v24 = vrot.slane %v959_v16, 1 }
  0x5d   : > { %840 = vmatmul.bf16.gmra.mxu3 %v763_v19  ;;  %1359 = vmatpush.bf16.msra.mxu2 %v2447_v21  ;;  %v962_v19 = vshll.u32 %v2740_v11, 16  ;;  %v2430_v21 = vld [vmem:[#allocation2 + $0x140] sm:$0xff] }
  0x5e   : > { %1599 = vmatpush.bf16.msra.mxu3 %v2461_v26  ;;  %1172 = vmatpush.bf16.msra.mxu1 %v2433_v29  ;;  %v2466_v29 = vld [vmem:[#allocation2 + $0x200] sm:$0xff] }
  0x5f   : > { %520 = vmatmul.bf16.gmra.mxu1 %v2642_v15  ;;  %v764_v15 = vrot.slane %v2703_v22, 1  ;;  %1745 = vmatpush.bf16.msra.mxu0 %v2469_v38  ;;  %v964_v25 = vrot.slane %v962_v19, 2  ;;  %v2786_v19 = vld [vmem:[%s2621_s27 + $0x18] sm:$0xff] }
  0x60   : > { %1035 = vmatmul.bf16.gmra.mxu0 %v930_v23  ;;  %v2458_v23 = vld [vmem:[#allocation2 + $0x1c0] sm:$0xff] }
  0x61   : > { %v765_v34 = vsel %vm571_vm1, %v762_v12, %v764_v15  ;;  %1360 = vmatpush.bf16.msra.mxu2 %v2446_v39  ;;  %v767_v48 = vsel %vm571_vm1, %v764_v15, %v766_v46  ;;  %v751_v12 = vunpack.c.l.b16 %v708_v4  ;;  %v965_v27 = vor.u32 %v964_v25, %v961_v24  ;;  %v1411_v15 = vld [vmem:[%s2621_s27 + $0x8] sm:$0xc] }
  0x62   : > { %1600 = vmatpush.bf16.msra.mxu3 %v2460_v40  ;;  %1173 = vmatpush.bf16.msra.mxu1 %v2432_v43 }
  0x63   : > { %1746 = vmatpush.bf16.msra.mxu0 %v2468_v52  ;;  %v758_v20 = vpack.c.b16 %v751_v12, %v751_v12  ;;  %v966_v31 = vsel %vm904_vm2, %v956_v0, %v965_v27 }
  0x65   : > { %1361 = vmatpush.bf16.msra.mxu2 %v2445_v53  ;;  %v770_v26 = vrot.slane %v758_v20, 1 }
  0x66   : > { %1601 = vmatpush.bf16.msra.mxu3 %v2459_v54  ;;  %1174 = vmatpush.bf16.msra.mxu1 %v2431_v55 }
  0x67   : > { %1747 = vmatpush.bf16.msra.mxu0 %v2467_v9  ;;  %v771_v28 = vsel %vm571_vm1, %v768_v62, %v770_v26  ;;  %v1288_v9 = vrot.slane %v2439_v59, 2  ;;  %v2441_v59 = vld [vmem:[%s2621_s27 + $0x20] sm:$0xff] }
  0x69   : > { %1362 = vmatpush.bf16.msra.mxu2 %v2444_v14 }
  0x6a   : > { %1602 = vmatpush.bf16.msra.mxu3 %v2458_v23  ;;  %1175 = vmatpush.bf16.msra.mxu1 %v2430_v21 }
  0x6b   : > { %1748 = vmatpush.bf16.msra.mxu0 %v2466_v29 }
  0x6c   : > { %658 = vmatmul.bf16.gmra.mxu2 %v578_v35  ;;  %v2754_v35 = vld [vmem:[%s2621_s27 + $0x10] sm:$0xff] }
  0x6d   : > { %845 = vmatmul.bf16.gmra.mxu3 %v765_v34  ;;  %v1487_v43 = vshrl.u32 %v2754_v35, 16  ;;  %v1490_v44 = vshll.u32 %v2754_v35, 16  ;;  %v1674_v12 = vrot.slane %v2754_v35, 3  ;;  %v1816_v35 = vld [vmem:[%s2995_s2 + $0x10] sm:$0xff] }
  0x6f   : > { %525 = vmatmul.bf16.gmra.mxu1 %v2625_v6  ;;  %v579_v6 = vrot.slane %v2628_v7, 1  ;;  %v1489_v53 = vrot.slane %v1487_v43, 2  ;;  %v1492_v54 = vrot.slane %v1490_v44, 3 }
  0x70   : > { %1040 = vmatmul.bf16.gmra.mxu0 %v939_v36 }
  0x71   : > { %v580_v49 = vsel %vm571_vm1, %v577_v32, %v579_v6  ;;  %v227_v32 = vld [vmem:[%s2621_s27 + $0x30] sm:$0x3]  ;;  %v1493_v1 = vor.u32 %v1492_v54, %v1489_v53 }
  0x72   : > { %v450_v34 = vunpack.c.l.b16 %v227_v32 }
  0x74   : > { %v451_v38 = vpack.c.b16 %v450_v34, %v450_v34 }
  0x7c   : > { %663 = vmatmul.bf16.gmra.mxu2 %v580_v49 }
  0x7d   : > { %850 = vmatmul.bf16.gmra.mxu3 %v767_v48  ;;  %v1670_v48 = vunpack.c.l.b16 %v1651_v45 }
  0x7f   : > { %530 = vmatmul.bf16.gmra.mxu1 %v2634_v10  ;;  %v581_v10 = vrot.slane %v2638_v13, 1 }
  0x80   : > { %1045 = vmatmul.bf16.gmra.mxu0 %v948_v50 }
  0x81   : > { %v582_v5 = vsel %vm571_vm1, %v579_v6, %v581_v10  ;;  %v2234_v6 = vld [vmem:[%s2621_s27 + $0x8] sm:$0xc] }
  0x82   : > { %v2235_v61 = vor.u32 %v2438_v47, %v2234_v6 }
  0x8c   : > { %668 = vmatmul.bf16.gmra.mxu2 %v582_v5  ;;  %v1101_v5 = vrot.slane %v2678_v18, 2 }
  0x8d   : > { %855 = vmatmul.bf16.gmra.mxu3 %v769_v2  ;;  %v2577_v2 = vmov 0  }
  0x8e   : > { %2528 = vset.pattern.permute.xlu0 %v2577_v2  ;;  %2529 = vset.pattern.permute.xlu1 %v2577_v2 }
  0x8f   : > { %535 = vmatmul.bf16.gmra.mxu1 %v2628_v7  ;;  %v583_v7 = vrot.slane %v2645_v17, 1  ;;  %v1456_v17 = vunpack.c.l.b16 %v1411_v15  ;;  %2530 = vset.pattern.permute.xlu2 %v2577_v2  ;;  %v2440_v15 = vld [vmem:[%s2621_s27 + $0x18] sm:$0xff] }
  0x90   : > { %1050 = vmatmul.bf16.gmra.mxu0 %v957_v8  ;;  %v1287_v8 = vrot.slane %v2235_v61, 2  ;;  %1829 = vperm.xlu0 %2528, %v1814_v60   ;;  %v1290_v34 = vrot.slane %v2440_v15, 2 }
  0x91   : > { %v584_v30 = vsel %vm571_vm1, %v581_v10, %v583_v7  ;;  %v1470_v36 = vpack.c.b16 %v1457_v33, %v1456_v17  ;;  %v1671_v10 = vpack.c.b16 %v1457_v33, %v1670_v48  ;;  %v1103_v33 = vrot.slane %v2692_v57, 2  ;;  %1839 = vperm.xlu1 %2529, %v1816_v35  }
  0x92   : > { %v1289_v23 = vsel %vm1099_vm4, %v1287_v8, %v1288_v9  ;;  %v1291_v44 = vsel %vm1099_vm4, %v1288_v9, %v1290_v34  ;;  %v1292_v8 = vrot.slane %v2441_v59, 2 }
  0x93   : > { %v1479_v41 = vshrl.u32 %v1470_v36, 16  ;;  %v1482_v42 = vshll.u32 %v1470_v36, 16  ;;  %v1676_v36 = vrot.slane %v2786_v19, 3  ;;  %v1104_v43 = vsel %vm1099_vm4, %v1101_v5, %v1103_v33 }
  0x95   : > { %v1481_v50 = vrot.slane %v1479_v41, 2  ;;  %v1484_v52 = vrot.slane %v1482_v42, 3  ;;  %v2814_v41 = vld [vmem:[%s2621_s27 + $0x20] sm:$0xff] }
  0x96   : > { %v1505_v6 = vshrl.u32 %v2814_v41, 16  ;;  %v1508_v47 = vshll.u32 %v2814_v41, 16  ;;  %v1678_v9 = vrot.slane %v2814_v41, 3 }
  0x97   : > { %v1485_v0 = vor.u32 %v1484_v52, %v1481_v50  ;;  %v1817_v50 = vld [vmem:[%s2995_s2 + $0x18] sm:$0xff] }
  0x98   : > { %v1510_v53 = vrot.slane %v1508_v47, 3 }
  0x99   : > { %v1494_v16 = vsel %vm1477_vm3, %v1485_v0, %v1493_v1  ;;  %1844 = vperm.xlu1 %2529, %v1817_v50  }
  0x9c   : > { %673 = vmatmul.bf16.gmra.mxu2 %v584_v30 }
  0x9d   : > { %860 = vmatmul.bf16.gmra.mxu3 %v771_v28 }
  0x9f   : > { %540 = vmatmul.bf16.gmra.mxu1 %v2638_v13  ;;  %v1078_v13 = vld [vmem:[%s2621_s27 + $0x4] sm:$0xc] }
  0xa0   : > { %1055 = vmatmul.bf16.gmra.mxu0 %v966_v31  ;;  %v1097_v46 = vunpack.c.l.b16 %v1078_v13 }
  0xa2   : > { %v1098_v58 = vpack.c.b16 %v740_v3, %v1097_v46  ;;  %v1673_v3 = vrot.slane %v1671_v10, 3  ;;  %v1677_v46 = vsel %vm1672_vm5, %v1674_v12, %v1676_v36 }
  0xa4   : > { %v1100_v4 = vrot.slane %v1098_v58, 2  ;;  %v1675_v21 = vsel %vm1672_vm5, %v1673_v3, %v1674_v12  ;;  %v2833_v12 = vld [vmem:[%s2621_s27 + $0x28] sm:$0xff] }
  0xa6   : > { %v1102_v18 = vsel %vm1099_vm4, %v1100_v4, %v1101_v5  ;;  %v1105_v5 = vrot.slane %v2703_v22, 2  ;;  %v1679_v22 = vsel %vm1672_vm5, %v1676_v36, %v1678_v9 }
  0xa9   : > { %v2756_v39 = vpop.f32.mrf.mxu1 }
  0xaa   : > { %v2758_v40 = vpop.f32.mrf.mxu0 }
  0xac   : > { %678 = vmatmul.bf16.gmra.mxu2 %v583_v7  ;;  %v1499_v7 = vshll.u32 %v2786_v19, 16 }
  0xad   : > { %865 = vmatmul.bf16.gmra.mxu3 %v770_v26  ;;  %v1496_v26 = vshrl.u32 %v2786_v19, 16 }
  0xae   : > { %v1501_v30 = vrot.slane %v1499_v7, 3  ;;  %v1517_v7 = vshll.u32 %v2833_v12, 16 }
  0xaf   : > { %545 = vmatmul.bf16.gmra.mxu1 %v451_v38  ;;  %v2766_v49 = vpop.f32.mrf.mxu2  ;;  %v1498_v29 = vrot.slane %v1496_v26, 2  ;;  %v1514_v26 = vshrl.u32 %v2833_v12, 16 }
  0xb0   : > { %1060 = vmatmul.bf16.gmra.mxu0 %v965_v27  ;;  %v1815_v27 = vld [vmem:[%s2995_s2 + $0x8] sm:$0xff] }
  0xb1   : > { %v2768_v55 = vpop.f32.mrf.mxu1  ;;  %1834 = vperm.xlu0 %2528, %v1815_v27   ;;  %v1502_v17 = vor.u32 %v1501_v30, %v1498_v29  ;;  %v1516_v15 = vrot.slane %v1514_v26, 2  ;;  %v1109_v26 = vrot.slane %v2725_v51, 2 }
  0xb2   : > { %v2770_v56 = vpop.f32.mrf.mxu3  ;;  %v2775_v62 = vpop.f32.mrf.mxu0 }
  0xb3   : > { %v1503_v13 = vsel %vm1477_vm3, %v1493_v1, %v1502_v17 }
  0xb7   : > { %v2782_v14 = vpop.f32.mrf.mxu2 }
  0xb9   : > { %v2788_v20 = vpop.f32.mrf.mxu1 }
  0xba   : > { %v447_v24 = vpop.f32.mrf.mxu3  ;;  %v420_v25 = vpop.f32.mrf.mxu0 }
  0xbc   : > { %1363 = vmatmul.bf16.vlgmr.msra.gmra.mxu2 %v1289_v23 }
  0xbd   : > { %1603 = vmatmul.bf16.vlgmr.msra.gmra.mxu3 %v1494_v16 }
  0xbf   : > { %1176 = vmatmul.bf16.vlgmr.msra.gmra.mxu1 %v1102_v18  ;;  %v2798_v28 = vpop.f32.mrf.mxu2  ;;  %v1106_v18 = vsel %vm1099_vm4, %v1103_v33, %v1105_v5 }
  0xc0   : > { %1749 = vmatmul.bf16.vlgmr.msra.gmra.mxu0 %v1675_v21 }
  0xc1   : > { %v2800_v31 = vpop.f32.mrf.mxu1 }
  0xc2   : > { %v2803_v32 = vpop.f32.mrf.mxu0 }
  0xc7   : > { %v2810_v38 = vpop.f32.mrf.mxu2 }
  0xcc   : > { %v516_v42 = vpop.f32.mrf.mxu1  ;;  %1368 = vmatmul.bf16.gmra.mxu2 %v1291_v44  ;;  %v1107_v44 = vrot.slane %v2714_v37, 2 }
  0xcd   : > { %v517_v57 = vadd.f32 %v516_v42, %v2758_v40  ;;  %1608 = vmatmul.bf16.gmra.mxu3 %v1503_v13  ;;  %v1031_v45 = vpop.f32.mrf.mxu0  ;;  %v1507_v40 = vrot.slane %v1505_v6, 2 }
  0xcf   : > { %1181 = vmatmul.bf16.gmra.mxu1 %v1104_v43  ;;  %v649_v52 = vpop.f32.mrf.mxu2  ;;  %v1511_v1 = vor.u32 %v1510_v53, %v1507_v40 }
  0xd0   : > { %v836_v48 = vpop.f32.mrf.mxu3  ;;  %1754 = vmatmul.bf16.gmra.mxu0 %v1677_v46  ;;  %v683_v54 = vadd.f32 %v649_v52, %v517_v57  ;;  %v1680_v46 = vrot.slane %v2833_v12, 3  ;;  %v1108_v52 = vsel %vm1099_vm4, %v1105_v5, %v1107_v44  ;;  %v2443_v12 = vld [vmem:[%s2621_s27 + $0x30] sm:$0xff] }
  0xd1   : > { %v1512_v3 = vsel %vm1477_vm3, %v1502_v17, %v1511_v1  ;;  %v1519_v17 = vrot.slane %v1517_v7, 3  ;;  %v1296_v7 = vrot.slane %v2443_v12, 2 }
  0xd2   : > { %v870_v61 = vadd.f32 %v836_v48, %v683_v54 }
  0xd3   : > { %v1520_v41 = vor.u32 %v1519_v17, %v1516_v15 }
  0xd4   : > { %v518_v58 = vpop.f32.mrf.mxu1  ;;  %v2827_v2 = vadd.f32 %v1031_v45, %v870_v61  ;;  %v1820_v45 = vld [vmem:[%s2995_s2 + $0x30] sm:$0xff] }
  0xd5   : > { %v519_v10 = vadd.f32 %v518_v58, %v2775_v62  ;;  %v1033_v0 = vpop.f32.mrf.mxu0  ;;  %v1293_v62 = vsel %vm1099_vm4, %v1290_v34, %v1292_v8  ;;  %v2843_v34 = vld [vmem:[%s2621_s27 + $0x28] sm:$0xff]  ;;  %1859 = vperm.xlu0 %2528, %v1820_v45   ;;  %v1521_v47 = vsel %vm1477_vm3, %v1511_v1, %v1520_v41  ;;  %v1681_v58 = vsel %vm1672_vm5, %v1678_v9, %v1680_v46  ;;  %v1818_v1 = vld [vmem:[%s2995_s2 + $0x20] sm:$0xff] }
  0xd6   : > { %v1294_v57 = vrot.slane %v2843_v34, 2  ;;  %1849 = vperm.xlu2 %2530, %v1818_v1   ;;  %v1110_v34 = vsel %vm1099_vm4, %v1107_v44, %v1109_v26  ;;  %v1279_v44 = vunpack.c.h.b16 %v2732_v63  ;;  %v1111_v63 = vrot.slane %v2740_v11, 2 }
  0xd7   : > { %v651_v60 = vpop.f32.mrf.mxu2 }
  0xd8   : > { %v838_v4 = vpop.f32.mrf.mxu3  ;;  %v684_v16 = vadd.f32 %v651_v60, %v519_v10  ;;  %v1295_v37 = vsel %vm1099_vm4, %v1292_v8, %v1294_v57 }
  0xda   : > { %v871_v23 = vadd.f32 %v838_v4, %v684_v16  ;;  %v1823_v4 = vld [vmem:[%s2995_s2 + $0x48] sm:$0xff] }
  0xdc   : > { %v521_v19 = vpop.f32.mrf.mxu1  ;;  %1373 = vmatmul.bf16.gmra.mxu2 %v1293_v62  ;;  %v2840_v27 = vadd.f32 %v1033_v0, %v871_v23  ;;  %v2310_v23 = vld [vmem:[%s2621_s27 + $0x38] sm:$0xf] }
  0xdd   : > { %v522_v24 = vadd.f32 %v521_v19, %v420_v25  ;;  %1613 = vmatmul.bf16.gmra.mxu3 %v1512_v3  ;;  %v1036_v21 = vpop.f32.mrf.mxu0  ;;  %1874 = vperm.xlu0 %2528, %v1823_v4  }
  0xdf   : > { %1186 = vmatmul.bf16.gmra.mxu1 %v1106_v18  ;;  %v654_v30 = vpop.f32.mrf.mxu2 }
  0xe0   : > { %v841_v29 = vpop.f32.mrf.mxu3  ;;  %1759 = vmatmul.bf16.gmra.mxu0 %v1679_v22  ;;  %v685_v33 = vadd.f32 %v654_v30, %v522_v24  ;;  %v2457_v24 = vld [vmem:[%s2621_s27 + $0x38] sm:$0x10]  ;;  %v1826_v30 = vld [vmem:[%s2995_s2 + $0x60] sm:$0xf] }
  0xe2   : > { %v872_v35 = vadd.f32 %v841_v29, %v685_v33  ;;  %v1819_v29 = vld [vmem:[%s2995_s2 + $0x28] sm:$0xff]  ;;  %v2890_v33 = vor.u32 %v2457_v24, %v2310_v23 }
  0xe3   : > { %1854 = vperm.xlu2 %2530, %v1819_v29  }
  0xe4   : > { %v523_v25 = vpop.f32.mrf.mxu1  ;;  %v2846_v42 = vadd.f32 %v1036_v21, %v872_v35  ;;  %v1297_v35 = vsel %vm1099_vm4, %v1294_v57, %v1296_v7  ;;  %v1684_v1 = vrot.slane %v2890_v33, 3 }
  0xe5   : > { %v524_v36 = vadd.f32 %v523_v25, %v2803_v32  ;;  %v1038_v13 = vpop.f32.mrf.mxu0  ;;  %v2856_v32 = vld [vmem:[%s2621_s27 + $0x30] sm:$0xff]  ;;  %1889 = vperm.xlu0 %2528, %v1826_v30   ;;  %v1825_v30 = vld [vmem:[%s2995_s2 + $0x58] sm:$0xff] }
  0xe6   : > { %v1523_v59 = vshrl.u32 %v2856_v32, 16  ;;  %v1526_v61 = vshll.u32 %v2856_v32, 16 }
  0xe7   : > { %v656_v6 = vpop.f32.mrf.mxu2 }
  0xe8   : > { %v843_v43 = vpop.f32.mrf.mxu3  ;;  %v686_v48 = vadd.f32 %v656_v6, %v524_v36  ;;  %v1525_v8 = vrot.slane %v1523_v59, 2  ;;  %v1528_v9 = vrot.slane %v1526_v61, 3  ;;  %v1532_v6 = vshrl.u32 %v2890_v33, 16 }
  0xea   : > { %v873_v40 = vadd.f32 %v843_v43, %v686_v48  ;;  %v1529_v62 = vor.u32 %v1528_v9, %v1525_v8  ;;  %v1534_v48 = vrot.slane %v1532_v6, 2  ;;  %v1112_v9 = vsel %vm1099_vm4, %v1109_v26, %v1111_v63 }
  0xec   : > { %v526_v50 = vpop.f32.mrf.mxu1  ;;  %1378 = vmatmul.bf16.gmra.mxu2 %v1295_v37  ;;  %v2864_v10 = vadd.f32 %v1038_v13, %v873_v40  ;;  %v1530_v17 = vsel %vm1477_vm3, %v1520_v41, %v1529_v62  ;;  %v1535_v41 = vshll.u32 %v2890_v33, 16  ;;  %v1286_v37 = vpack.c.b16 %v1279_v44, %v1279_v44 }
  0xed   : > { %v527_v53 = vadd.f32 %v526_v50, %v2756_v39  ;;  %1618 = vmatmul.bf16.gmra.mxu3 %v1521_v47  ;;  %v1041_v54 = vpop.f32.mrf.mxu0  ;;  %v1821_v39 = vld [vmem:[%s2995_s2 + $0x38] sm:$0xff] }
  0xee   : > { %1864 = vperm.xlu1 %2529, %v1821_v39  }
  0xef   : > { %1191 = vmatmul.bf16.gmra.mxu1 %v1108_v52  ;;  %v659_v5 = vpop.f32.mrf.mxu2 }
  0xf0   : > { %v846_v0 = vpop.f32.mrf.mxu3  ;;  %1764 = vmatmul.bf16.gmra.mxu0 %v1681_v58  ;;  %v687_v60 = vadd.f32 %v659_v5, %v527_v53 }
  0xf2   : > { %v874_v16 = vadd.f32 %v846_v0, %v687_v60  ;;  %v1298_v0 = vrot.slane %v1286_v37, 2 }
  0xf4   : > { %v528_v3 = vpop.f32.mrf.mxu1  ;;  %v2879_v21 = vadd.f32 %v1041_v54, %v874_v16  ;;  %v1299_v60 = vsel %vm1099_vm4, %v1296_v7, %v1298_v0 }
  0xf5   : > { %v529_v19 = vadd.f32 %v528_v3, %v2768_v55  ;;  %v1043_v18 = vpop.f32.mrf.mxu0  ;;  %v1682_v55 = vrot.slane %v2856_v32, 3 }
  0xf7   : > { %v661_v15 = vpop.f32.mrf.mxu2  ;;  %v1683_v45 = vsel %vm1672_vm5, %v1680_v46, %v1682_v55  ;;  %v1537_v46 = vrot.slane %v1535_v41, 3  ;;  %v1685_v12 = vsel %vm1672_vm5, %v1682_v55, %v1684_v1 }
  0xf8   : > { %v848_v22 = vpop.f32.mrf.mxu3  ;;  %v688_v25 = vadd.f32 %v661_v15, %v529_v19  ;;  %v1822_v19 = vld [vmem:[%s2995_s2 + $0x40] sm:$0xff] }
  0xf9   : > { %v1538_v58 = vor.u32 %v1537_v46, %v1534_v48  ;;  %1869 = vperm.xlu2 %2530, %v1822_v19  }
  0xfa   : > { %v875_v36 = vadd.f32 %v848_v22, %v688_v25 }
  0xfb   : > { %v1539_v4 = vsel %vm1477_vm3, %v1529_v62, %v1538_v58 }
  0xfc   : > { %v531_v51 = vpop.f32.mrf.mxu1  ;;  %1383 = vmatmul.bf16.gmra.mxu2 %v1297_v35  ;;  %v2898_v47 = vadd.f32 %v1043_v18, %v875_v36 }
  0xfd   : > { %v532_v13 = vadd.f32 %v531_v51, %v2788_v20  ;;  %1623 = vmatmul.bf16.gmra.mxu3 %v1530_v17  ;;  %v1046_v43 = vpop.f32.mrf.mxu0  ;;  %v1824_v20 = vld [vmem:[%s2995_s2 + $0x50] sm:$0xff] }
  0xfe   : > { %1879 = vperm.xlu1 %2529, %v1824_v20  }
  0xff   : > { %1196 = vmatmul.bf16.gmra.mxu1 %v1110_v34  ;;  %v664_v57 = vpop.f32.mrf.mxu2 }
 0x100   : > { %v851_v32 = vpop.f32.mrf.mxu3  ;;  %1769 = vmatmul.bf16.gmra.mxu0 %v1683_v45  ;;  %v689_v50 = vadd.f32 %v664_v57, %v532_v13 }
 0x101   : > { %1884 = vperm.xlu2 %2530, %v1825_v30  }
 0x102   : > { %v876_v40 = vadd.f32 %v851_v32, %v689_v50  ;;  %v2578_v32 = vmov 0.0  }
 0x103   : > { %1918 = vst [vmem:[%s2934_s7] sm:$0xff] %v2578_v32 }
 0x104   : > { %v533_v52 = vpop.f32.mrf.mxu1  ;;  %v2905_v59 = vadd.f32 %v1046_v43, %v876_v40  ;;  %1919 = vst [vmem:[%s2934_s7 + $0x8] sm:$0x7] %v2578_v32 }
 0x105   : > { %v534_v53 = vadd.f32 %v533_v52, %v2800_v31  ;;  %v1048_v54 = vpop.f32.mrf.mxu0  ;;  %1920 = vst [vmem:[%s2934_s7 + $0x6f] sm:$0xff] %v2578_v32 }
 0x106   : > { %1921 = vst [vmem:[%s2934_s7 + $0x77] sm:$0x7] %v2578_v32 }
 0x107   : > { %v666_v39 = vpop.f32.mrf.mxu2 }
 0x108   : > { %v853_v61 = vpop.f32.mrf.mxu3  ;;  %v690_v5 = vadd.f32 %v666_v39, %v534_v53 }
 0x10a   : > { %v877_v31 = vadd.f32 %v853_v61, %v690_v5 }
 0x10c   : > { %v536_v8 = vpop.f32.mrf.mxu1  ;;  %1388 = vmatmul.bf16.gmra.mxu2 %v1299_v60  ;;  %v2913_v11 = vadd.f32 %v1048_v54, %v877_v31 }
 0x10d   : > { %1628 = vmatmul.bf16.gmra.mxu3 %v1539_v4  ;;  %v1051_v3 = vpop.f32.mrf.mxu0  ;;  %v537_v18 = vadd.f32 %v536_v8, %v2766_v49 }
 0x10f   : > { %1201 = vmatmul.bf16.gmra.mxu1 %v1112_v9  ;;  %v669_v62 = vpop.f32.mrf.mxu2 }
 0x110   : > { %v856_v16 = vpop.f32.mrf.mxu3  ;;  %1774 = vmatmul.bf16.gmra.mxu0 %v1685_v12  ;;  %v691_v23 = vadd.f32 %v669_v62, %v537_v18  ;;  %v1830_v12 = vpop.permute.xlu0 %1829 }
 0x112   : > { %v878_v22 = vadd.f32 %v856_v16, %v691_v23 }
 0x114   : > { %v538_v24 = vpop.f32.mrf.mxu1  ;;  %v2919_v7 = vadd.f32 %v1051_v3, %v878_v22  ;;  %v2950_v3 = vld [vmem:[%s2994_s1] ss:$0 sm:$0xff] }
 0x115   : > { %v1053_v26 = vpop.f32.mrf.mxu0  ;;  %v539_v55 = vadd.f32 %v538_v24, %v2782_v14 }
 0x117   : > { %v671_v15 = vpop.f32.mrf.mxu2 }
 0x118   : > { %v858_v29 = vpop.f32.mrf.mxu3  ;;  %v692_v17 = vadd.f32 %v671_v15, %v539_v55 }
 0x11a   : > { %v879_v33 = vadd.f32 %v858_v29, %v692_v17 }
 0x11c   : > { %v541_v49 = vpop.f32.mrf.mxu1  ;;  %1393 = vmatmul.bf16.gmra.mxu2 %v1298_v0  ;;  %v2925_v51 = vadd.f32 %v1053_v26, %v879_v33 }
 0x11d   : > { %1633 = vmatmul.bf16.gmra.mxu3 %v1538_v58  ;;  %v1056_v25 = vpop.f32.mrf.mxu0  ;;  %v542_v35 = vadd.f32 %v541_v49, %v2798_v28 }
 0x11f   : > { %1206 = vmatmul.bf16.gmra.mxu1 %v1111_v63  ;;  %v674_v36 = vpop.f32.mrf.mxu2 }
 0x120   : > { %v861_v34 = vpop.f32.mrf.mxu3  ;;  %1779 = vmatmul.bf16.gmra.mxu0 %v1684_v1  ;;  %v693_v13 = vadd.f32 %v674_v36, %v542_v35 }
 0x122   : > { %v880_v14 = vadd.f32 %v861_v34, %v693_v13  ;;  %v1840_v13 = vpop.permute.xlu1 %1839 }
 0x123   : > { %v1835_v15 = vpop.permute.xlu0 %1834 }
 0x124   : > { %v543_v43 = vpop.f32.mrf.mxu1  ;;  %v2929_v6 = vadd.f32 %v1056_v25, %v880_v14 }
 0x125   : > { %v1058_v45 = vpop.f32.mrf.mxu0  ;;  %v544_v28 = vadd.f32 %v543_v43, %v2810_v38 }
 0x127   : > { %v676_v44 = vpop.f32.mrf.mxu2 }
 0x128   : > { %v863_v41 = vpop.f32.mrf.mxu3  ;;  %v694_v20 = vadd.f32 %v676_v44, %v544_v28 }
 0x12a   : > { %v881_v48 = vadd.f32 %v863_v41, %v694_v20 }
 0x12c   : > { %v546_v57 = vpop.f32.mrf.mxu1  ;;  %v2941_v50 = vadd.f32 %v1058_v45, %v881_v48 }
 0x12d   : > { %v1061_v46 = vpop.f32.mrf.mxu0  ;;  %v547_v37 = vadd.f32 %v546_v57, %v2770_v56 }
 0x12f   : > { %v679_v40 = vpop.f32.mrf.mxu2 }
 0x130   : > { %v866_v52 = vpop.f32.mrf.mxu3  ;;  %v695_v53 = vadd.f32 %v679_v40, %v547_v37 }
 0x132   : > { %v882_v58 = vadd.f32 %v866_v52, %v695_v53  ;;  %v1845_v52 = vpop.permute.xlu1 %1844 }
 0x134   : > { %v548_v54 = vpop.f32.mrf.mxu1  ;;  %v2944_v61 = vadd.f32 %v1061_v46, %v882_v58 }
 0x135   : > { %v1063_v38 = vpop.f32.mrf.mxu0 }
 0x137   : > { %v681_v0 = vpop.f32.mrf.mxu2 }
 0x138   : > { %v868_v63 = vpop.f32.mrf.mxu3  ;;  %v1850_v0 = vpop.permute.xlu2 %1849 }
 0x13c   : > { %v1177_v1 = vpop.f32.mrf.mxu1 }
 0x13d   : > { %v1750_v39 = vpop.f32.mrf.mxu0  ;;  %v1211_v5 = vadd.f32 %v1177_v1, %v2827_v2 }
 0x13f   : > { %v1364_v8 = vpop.f32.mrf.mxu2 }
 0x140   : > { %v1604_v4 = vpop.f32.mrf.mxu3  ;;  %v1398_v9 = vadd.f32 %v1364_v8, %v1211_v5 }
 0x142   : > { %v1638_v31 = vadd.f32 %v1604_v4, %v1398_v9 }
 0x144   : > { %v1179_v60 = vpop.f32.mrf.mxu1  ;;  %v1784_v16 = vadd.f32 %v1750_v39, %v1638_v31 }
 0x145   : > { %v1752_v56 = vpop.f32.mrf.mxu0  ;;  %v1212_v18 = vadd.f32 %v1179_v60, %v2840_v27 }
 0x146   : > { %v1801_v62 = vadd.f32 %v2950_v3, %v1784_v16 }
 0x147   : > { %v1366_v23 = vpop.f32.mrf.mxu2 }
 0x148   : > { %v1606_v19 = vpop.f32.mrf.mxu3  ;;  %v1892_v2 = vmul.f32 %v1830_v12, %v1801_v62  ;;  %v1399_v24 = vadd.f32 %v1366_v23, %v1212_v18 }
 0x14a   : > { %1905 = vst [vmem:[%s2934_s7 + $0xb] sm:$0xff] %v1892_v2  ;;  %v1639_v26 = vadd.f32 %v1606_v19, %v1399_v24  ;;  %v1855_v19 = vpop.permute.xlu2 %1854 }
 0x14c   : > { %v1182_v22 = vpop.f32.mrf.mxu1  ;;  %v1785_v30 = vadd.f32 %v1752_v56, %v1639_v26 }
 0x14d   : > { %v1755_v29 = vpop.f32.mrf.mxu0  ;;  %v1213_v17 = vadd.f32 %v1182_v22, %v2846_v42 }
 0x14e   : > { %v1802_v49 = vadd.f32 %v2950_v3, %v1785_v30 }
 0x14f   : > { %v1369_v33 = vpop.f32.mrf.mxu2 }
 0x150   : > { %v1609_v55 = vpop.f32.mrf.mxu3  ;;  %v1893_v27 = vmul.f32 %v1835_v15, %v1802_v49  ;;  %v1400_v25 = vadd.f32 %v1369_v33, %v1213_v17 }
 0x152   : > { %1906 = vst [vmem:[%s2934_s7 + $0x13] sm:$0xff] %v1893_v27  ;;  %v1640_v35 = vadd.f32 %v1609_v55, %v1400_v25  ;;  %v1860_v55 = vpop.permute.xlu0 %1859 }
 0x154   : > { %v1184_v34 = vpop.f32.mrf.mxu1  ;;  %v1786_v43 = vadd.f32 %v1755_v29, %v1640_v35 }
 0x155   : > { %v1757_v36 = vpop.f32.mrf.mxu0  ;;  %v1214_v45 = vadd.f32 %v1184_v34, %v2864_v10 }
 0x156   : > { %v1803_v41 = vadd.f32 %v2950_v3, %v1786_v43 }
 0x157   : > { %v1371_v28 = vpop.f32.mrf.mxu2 }
 0x158   : > { %v1611_v14 = vpop.f32.mrf.mxu3  ;;  %v1894_v42 = vmul.f32 %v1840_v13, %v1803_v41  ;;  %v1401_v32 = vadd.f32 %v1371_v28, %v1214_v45 }
 0x15a   : > { %1907 = vst [vmem:[%s2934_s7 + $0x1b] sm:$0xff] %v1894_v42  ;;  %v1641_v20 = vadd.f32 %v1611_v14, %v1401_v32 }
 0x15c   : > { %v1187_v44 = vpop.f32.mrf.mxu1  ;;  %v1787_v48 = vadd.f32 %v1757_v36, %v1641_v20 }
 0x15d   : > { %v1760_v57 = vpop.f32.mrf.mxu0  ;;  %v1215_v37 = vadd.f32 %v1187_v44, %v2879_v21 }
 0x15e   : > { %v1804_v40 = vadd.f32 %v2950_v3, %v1787_v48 }
 0x15f   : > { %v1374_v53 = vpop.f32.mrf.mxu2 }
 0x160   : > { %v1614_v46 = vpop.f32.mrf.mxu3  ;;  %v1895_v10 = vmul.f32 %v1845_v52, %v1804_v40  ;;  %v1402_v54 = vadd.f32 %v1374_v53, %v1215_v37  ;;  %v1865_v13 = vpop.permute.xlu1 %1864 }
 0x162   : > { %1908 = vst [vmem:[%s2934_s7 + $0x23] sm:$0xff] %v1895_v10  ;;  %v1642_v38 = vadd.f32 %v1614_v46, %v1402_v54 }
 0x164   : > { %v1189_v58 = vpop.f32.mrf.mxu1  ;;  %v1788_v1 = vadd.f32 %v1760_v57, %v1642_v38  ;;  %v1870_v57 = vpop.permute.xlu2 %1869 }
 0x165   : > { %v1762_v63 = vpop.f32.mrf.mxu0  ;;  %v1216_v4 = vadd.f32 %v1189_v58, %v2898_v47 }
 0x166   : > { %v1805_v5 = vadd.f32 %v2950_v3, %v1788_v1 }
 0x167   : > { %v1376_v8 = vpop.f32.mrf.mxu2 }
 0x168   : > { %v1616_v39 = vpop.f32.mrf.mxu3  ;;  %v1896_v21 = vmul.f32 %v1850_v0, %v1805_v5  ;;  %v1403_v9 = vadd.f32 %v1376_v8, %v1216_v4  ;;  %v1875_v0 = vpop.permute.xlu0 %1874 }
 0x16a   : > { %1909 = vst [vmem:[%s2934_s7 + $0x2b] sm:$0xff] %v1896_v21  ;;  %v1643_v31 = vadd.f32 %v1616_v39, %v1403_v9 }
 0x16c   : > { %v1192_v60 = vpop.f32.mrf.mxu1  ;;  %v1789_v12 = vadd.f32 %v1762_v63, %v1643_v31 }
 0x16d   : > { %v1765_v56 = vpop.f32.mrf.mxu0  ;;  %v1217_v18 = vadd.f32 %v1192_v60, %v2905_v59 }
 0x16e   : > { %v1806_v62 = vadd.f32 %v2950_v3, %v1789_v12 }
 0x16f   : > { %v1379_v23 = vpop.f32.mrf.mxu2 }
 0x170   : > { %v1619_v16 = vpop.f32.mrf.mxu3  ;;  %v1897_v47 = vmul.f32 %v1855_v19, %v1806_v62  ;;  %v1404_v2 = vadd.f32 %v1379_v23, %v1217_v18 }
 0x172   : > { %1910 = vst [vmem:[%s2934_s7 + $0x33] sm:$0xff] %v1897_v47  ;;  %v1644_v22 = vadd.f32 %v1619_v16, %v1404_v2 }
 0x174   : > { %v1194_v24 = vpop.f32.mrf.mxu1  ;;  %v1790_v29 = vadd.f32 %v1765_v56, %v1644_v22  ;;  %v1880_v56 = vpop.permute.xlu1 %1879 }
 0x175   : > { %v1767_v26 = vpop.f32.mrf.mxu0  ;;  %v1218_v15 = vadd.f32 %v1194_v24, %v2913_v11  ;;  %v1885_v22 = vpop.permute.xlu2 %1884 }
 0x176   : > { %v1807_v17 = vadd.f32 %v2950_v3, %v1790_v29 }
 0x177   : > { %v1381_v49 = vpop.f32.mrf.mxu2 }
 0x178   : > { %v1621_v30 = vpop.f32.mrf.mxu3  ;;  %v1898_v59 = vmul.f32 %v1860_v55, %v1807_v17  ;;  %v1405_v33 = vadd.f32 %v1381_v49, %v1218_v15 }
 0x17a   : > { %1911 = vst [vmem:[%s2934_s7 + $0x3b] sm:$0xff] %v1898_v59  ;;  %v1645_v25 = vadd.f32 %v1621_v30, %v1405_v33  ;;  %v1890_v33 = vpop.permute.xlu0 %1889 }
 0x17c   : > { %v1197_v27 = vpop.f32.mrf.mxu1  ;;  %v1791_v35 = vadd.f32 %v1767_v26, %v1645_v25 }
 0x17d   : > { %v1770_v34 = vpop.f32.mrf.mxu0  ;;  %v1219_v43 = vadd.f32 %v1197_v27, %v2919_v7 }
 0x17e   : > { %v1808_v14 = vadd.f32 %v2950_v3, %v1791_v35 }
 0x17f   : > { %v1384_v45 = vpop.f32.mrf.mxu2 }
 0x180   : > { %v1624_v36 = vpop.f32.mrf.mxu3  ;;  %v1899_v11 = vmul.f32 %v1865_v13, %v1808_v14  ;;  %v1406_v41 = vadd.f32 %v1384_v45, %v1219_v43 }
 0x182   : > { %1912 = vst [vmem:[%s2934_s7 + $0x43] sm:$0xff] %v1899_v11  ;;  %v1646_v42 = vadd.f32 %v1624_v36, %v1406_v41 }
 0x184   : > { %v1199_v28 = vpop.f32.mrf.mxu1  ;;  %v1792_v44 = vadd.f32 %v1770_v34, %v1646_v42 }
 0x185   : > { %v1772_v32 = vpop.f32.mrf.mxu0  ;;  %v1220_v48 = vadd.f32 %v1199_v28, %v2925_v51 }
 0x186   : > { %v1809_v46 = vadd.f32 %v2950_v3, %v1792_v44 }
 0x187   : > { %v1386_v52 = vpop.f32.mrf.mxu2 }
 0x188   : > { %v1626_v20 = vpop.f32.mrf.mxu3  ;;  %v1900_v7 = vmul.f32 %v1870_v57, %v1809_v46  ;;  %v1407_v37 = vadd.f32 %v1386_v52, %v1220_v48 }
 0x18a   : > { %1913 = vst [vmem:[%s2934_s7 + $0x4b] sm:$0xff] %v1900_v7  ;;  %v1647_v53 = vadd.f32 %v1626_v20, %v1407_v37 }
 0x18c   : > { %v1202_v40 = vpop.f32.mrf.mxu1  ;;  %v1793_v54 = vadd.f32 %v1772_v32, %v1647_v53 }
 0x18d   : > { %v1775_v10 = vpop.f32.mrf.mxu0  ;;  %v1221_v63 = vadd.f32 %v1202_v40, %v2929_v6 }
 0x18e   : > { %v1810_v38 = vadd.f32 %v2950_v3, %v1793_v54 }
 0x18f   : > { %v1389_v1 = vpop.f32.mrf.mxu2 }
 0x190   : > { %v1629_v58 = vpop.f32.mrf.mxu3  ;;  %v1901_v51 = vmul.f32 %v1875_v0, %v1810_v38  ;;  %v1408_v39 = vadd.f32 %v1389_v1, %v1221_v63 }
 0x192   : > { %1914 = vst [vmem:[%s2934_s7 + $0x53] sm:$0xff] %v1901_v51  ;;  %v1648_v5 = vadd.f32 %v1629_v58, %v1408_v39 }
 0x194   : > { %v1204_v4 = vpop.f32.mrf.mxu1  ;;  %v1794_v21 = vadd.f32 %v1775_v10, %v1648_v5 }
 0x195   : > { %v1777_v8 = vpop.f32.mrf.mxu0  ;;  %v1222_v31 = vadd.f32 %v1204_v4, %v2941_v50 }
 0x196   : > { %v1811_v60 = vadd.f32 %v2950_v3, %v1794_v21 }
 0x197   : > { %v1391_v12 = vpop.f32.mrf.mxu2 }
 0x198   : > { %v1631_v9 = vpop.f32.mrf.mxu3  ;;  %v1902_v16 = vmul.f32 %v1880_v56, %v1811_v60  ;;  %v1409_v6 = vadd.f32 %v1391_v12, %v1222_v31 }
 0x19a   : > { %1915 = vst [vmem:[%s2934_s7 + $0x5b] sm:$0xff] %v1902_v16  ;;  %v1649_v18 = vadd.f32 %v1631_v9, %v1409_v6 }
 0x19c   : > { %v1207_v19 = vpop.f32.mrf.mxu1  ;;  %v1795_v23 = vadd.f32 %v1777_v8, %v1649_v18 }
 0x19d   : > { %v1780_v62 = vpop.f32.mrf.mxu0  ;;  %v1223_v24 = vadd.f32 %v1207_v19, %v2944_v61 }
 0x19e   : > { %v1812_v2 = vadd.f32 %v2950_v3, %v1795_v23 }
 0x19f   : > { %v1394_v26 = vpop.f32.mrf.mxu2 }
 0x1a0   : > { %v1634_v47 = vpop.f32.mrf.mxu3  ;;  %v1903_v29 = vmul.f32 %v1885_v22, %v1812_v2  ;;  %v1410_v50 = vadd.f32 %v1394_v26, %v1223_v24 }
 0x1a2   : > { %1916 = vst [vmem:[%s2934_s7 + $0x63] sm:$0xff] %v1903_v29  ;;  %v1650_v55 = vadd.f32 %v1634_v47, %v1410_v50 }
 0x1a4   : > { %v1209_v30 = vpop.f32.mrf.mxu1  ;;  %v1796_v17 = vadd.f32 %v1780_v62, %v1650_v55 }
 0x1a5   : > { %v1782_v15 = vpop.f32.mrf.mxu0 }
 0x1a6   : > { %v1813_v59 = vadd.f32 %v2950_v3, %v1796_v17 }
 0x1a7   : > { %v1396_v27 = vpop.f32.mrf.mxu2 }
 0x1a8   : > { %v1636_v49 = vpop.f32.mrf.mxu3  ;;  %v1904_v25 = vmul.f32 %v1890_v33, %v1813_v59 }
 0x1aa   : > { %1917 = vst [vmem:[%s2934_s7 + $0x6b] sm:$0xf] %v1904_v25 }
 0x1ab PF: > { %s15_s15 = sadd.s32 1, %s2572_s15  }
 0x1ac   : > { %p12_p7 = scmp.ge.s32.totalorder %s15_s15, 4  }
 0x1ae   :  { %14 = sbr.rel (!%p12_p7) target bundleno = 1 (0x1), region = 79 }
 0x1b3   :  { %1943 = vsyncpa [#allocation3], 1 }
 0x1b4   :  { %1945 = vsyncpa [#allocation3 + $0x1], 1 }

</bundles_post_ra>
